<compile_context>
chip_gen: v7x
topology: tpu7x:2x2x1
jax: 0.10.0
libtpu: 0.0.40
codegen_flags: <defaults>
</compile_context>

<pallas_src>
import jax
import jax.numpy as jnp
from jax.experimental import pallas as pl
from jax.experimental.pallas import tpu as pltpu  # noqa: F401  (TPU backend)

# ----------------------------- configuration -------------------------------
P_X, P_Y = 3, 3          # pooling window
K_1, K_2 = 4, 8          # channel counts (small versions of 30 / 80)
N_C = 1                  # input channels
HID = 16                 # hard-coded Linear(16,16) size in the module
P_POOL = P_X * P_Y
LANE = 128

# ----------------------------- Pallas kernels ------------------------------


def _conv_matmul_kernel(w_ref, p_ref, o_ref):
    # (O, K) @ (K, Mp): output lane axis = large patch dimension -> lane-dense
    # (unmasked) stores; O (1..8) sits on sublanes.
    o_ref[...] = jnp.dot(w_ref[...], p_ref[...],
                         preferred_element_type=jnp.float32)


def conv_matmul(w_mat, patches_t):
    """w_mat (O, K) @ patches_t (K, M) -> (O, M); M padded to 128 internally."""
    O, K = w_mat.shape
    _, M = patches_t.shape
    Mp = pl.cdiv(M, LANE) * LANE
    p_pad = jnp.pad(patches_t, ((0, 0), (0, Mp - M)))
    out = pl.pallas_call(
        _conv_matmul_kernel,
        out_shape=jax.ShapeDtypeStruct((O, Mp), jnp.float32),
        grid=(1,),
        in_specs=[pl.BlockSpec((O, K), lambda i: (0, 0)),
                  pl.BlockSpec((K, Mp), lambda i: (0, 0))],
        out_specs=pl.BlockSpec((O, Mp), lambda i: (0, 0)),
    )(w_mat, p_pad)
    return out[:, :M]


def _pool_mlp_kernel(xt_ref, w1_ref, w2_ref, logits_ref, eta_ref):
    # Transposed layout: 9 features on sublanes, tiles (T, padded to 128-mult)
    # on lanes.  Linear -> tanh -> Linear; softmax over the 9-row sublane axis.
    h = jnp.tanh(jnp.dot(w1_ref[...], xt_ref[...],
                         preferred_element_type=jnp.float32))
    logits = jnp.dot(w2_ref[...], h, preferred_element_type=jnp.float32)
    logits_ref[...] = logits
    m = jnp.max(logits, axis=0, keepdims=True)
    e = jnp.exp(logits - m)
    eta_ref[...] = e / jnp.sum(e, axis=0, keepdims=True)


def pool_mlp_pallas(xt, w1, w2):
    P, Tp = xt.shape
    sd = jax.ShapeDtypeStruct((P, Tp), jnp.float32)
    full = pl.BlockSpec((P, Tp), lambda i: (0, 0))
    wspec = pl.BlockSpec((P, P), lambda i: (0, 0))
    return pl.pallas_call(
        _pool_mlp_kernel,
        out_shape=(sd, sd),
        grid=(1,),
        in_specs=[full, wspec, wspec],
        out_specs=(full, full),
    )(xt, w1, w2)


def _heads_kernel(x_ref, wh_ref, bh_ref, wm_ref, bm_ref, wv_ref, bv_ref,
                  eps_ref, mean_ref, logvar_ref, s_ref):
    # All K_2 encoder heads fused via block-diagonal (128,128) weights:
    # one MXU-shaped matmul per layer instead of 8 tiny (2,16)@(16,16) steps.
    x = x_ref[...]                                                # (B, 128)
    h = jnp.tanh(jnp.dot(x, wh_ref[...],
                         preferred_element_type=jnp.float32) + bh_ref[...])
    mean = jnp.dot(h, wm_ref[...],
                   preferred_element_type=jnp.float32) + bm_ref[...]
    logvar = jnp.dot(h, wv_ref[...],
                     preferred_element_type=jnp.float32) + bv_ref[...]
    mean_ref[...] = mean
    logvar_ref[...] = logvar
    # reparameterized sample: mean + exp(0.5*logvar) * eps
    s_ref[...] = mean + jnp.exp(0.5 * logvar) * eps_ref[...]


def encoder_heads_pallas(x, wh, bh, wm, bm, wv, bv, eps):
    B, D = x.shape
    xs = pl.BlockSpec((B, D), lambda i: (0, 0))
    ws = pl.BlockSpec((D, D), lambda i: (0, 0))
    bs = pl.BlockSpec((1, D), lambda i: (0, 0))
    sd = jax.ShapeDtypeStruct((B, D), jnp.float32)
    return pl.pallas_call(
        _heads_kernel,
        out_shape=(sd, sd, sd),
        grid=(1,),
        in_specs=[xs, ws, bs, ws, bs, ws, bs, xs],
        out_specs=(xs, xs, xs),
    )(x, wh, bh, wm, bm, wv, bv, eps)


# ------------------------------- conv glue ----------------------------------


def im2col_t(x, k):
    # x: (B, C, H, W) -> (C*k*k, B*OH*OW); row order (c, dy, dx), col (b, y, x)
    B, C, H, W = x.shape
    OH, OW = H - k + 1, W - k + 1
    cols = []
    for dy in range(k):
        for dx in range(k):
            cols.append(x[:, :, dy:dy + OH, dx:dx + OW])   # (B, C, OH, OW)
    p = jnp.stack(cols, axis=0)                            # (k*k, B, C, OH, OW)
    p = p.transpose(2, 0, 1, 3, 4)                         # (C, k*k, B, OH, OW)
    return p.reshape(C * k * k, B * OH * OW), (B, OH, OW)


def conv2d_pallas(x, w_mat, k):
    # valid conv, no bias; w_mat = weight.reshape(O, C*k*k)
    patches_t, (B, OH, OW) = im2col_t(x, k)
    out_t = conv_matmul(w_mat, patches_t)                  # (O, B*OH*OW)
    return out_t, (B, OH, OW)


def conv_transpose2d_pallas(x, w_conv_mat, k):
    # stride-1 ConvTranspose2d == full-padded conv with the flipped / swapped
    # kernel (w_conv_mat is pre-flipped & reshaped at init).
    xp = jnp.pad(x, ((0, 0), (0, 0), (k - 1, k - 1), (k - 1, k - 1)))
    return conv2d_pallas(xp, w_conv_mat, k)


def nchw_from_lane(out_t, O, B, OH, OW):
    return out_t.reshape(O, B, OH, OW).transpose(1, 0, 2, 3)


# ------------------------------ parameters ----------------------------------


def init_params(key):
    ks = jax.random.split(key, 12)

    def w(k, shape, fan_in):
        return jax.random.normal(k, shape, jnp.float32) / jnp.sqrt(
            jnp.float32(fan_in))

    enc1_w = w(ks[0], (K_1, N_C, 8, 8), N_C * 64)
    enc2_w = w(ks[1], (K_2, K_1, 4, 4), K_1 * 16)
    dec2_w = w(ks[2], (K_2, K_1, 4, 4), K_2 * 16)   # ConvTranspose (in,out,k,k)
    dec1_w = w(ks[3], (K_1, N_C, 8, 8), K_1 * 64)

    # Pre-reshaped matmul forms (no per-forward transposes feeding kernels).
    enc1_wm = enc1_w.reshape(K_1, N_C * 64)
    enc2_wm = enc2_w.reshape(K_2, K_1 * 16)
    dec2_wm = jnp.flip(dec2_w, axis=(2, 3)).transpose(1, 0, 2, 3).reshape(
        K_1, K_2 * 16)
    dec1_wm = jnp.flip(dec1_w, axis=(2, 3)).transpose(1, 0, 2, 3).reshape(
        N_C, K_1 * 64)

    # Pooling MLP: two Linear(9, 9, bias=False); used as W @ x^T in-kernel.
    pool_w1 = w(ks[4], (P_POOL, P_POOL), P_POOL)
    pool_w2 = w(ks[5], (P_POOL, P_POOL), P_POOL)

    # Block-diagonal fused encoder heads (K_2 independent 16x16 Linears each).
    def blockdiag(blocks):                     # blocks: (K_2, HID, HID) = W_i^T
        D = K_2 * HID
        mat = jnp.zeros((D, D), jnp.float32)
        for i in range(K_2):
            mat = mat.at[i * HID:(i + 1) * HID,
                         i * HID:(i + 1) * HID].set(blocks[i])
        return mat

    h_w = w(ks[6], (K_2, HID, HID), HID)
    mu_w = w(ks[7], (K_2, HID, HID), HID)
    lv_w = w(ks[8], (K_2, HID, HID), HID)
    h_b = w(ks[9], (K_2, HID), HID)
    mu_b = w(ks[10], (K_2, HID), HID)
    lv_b = w(ks[11], (K_2, HID), HID)

    return {
        "enc1_wm": enc1_wm, "enc2_wm": enc2_wm,
        "dec2_wm": dec2_wm, "dec1_wm": dec1_wm,
        "pool_w1": pool_w1, "pool_w2": pool_w2,
        "h_wb": blockdiag(h_w.transpose(0, 2, 1)),
        "mu_wb": blockdiag(mu_w.transpose(0, 2, 1)),
        "lv_wb": blockdiag(lv_w.transpose(0, 2, 1)),
        "h_bb": h_b.reshape(1, K_2 * HID),
        "mu_bb": mu_b.reshape(1, K_2 * HID),
        "lv_bb": lv_b.reshape(1, K_2 * HID),
        "alpha": jnp.float32(0.5),
    }


# ------------------------------ DGDN forward ---------------------------------


@jax.jit
def dgdn_forward(params, x, key):
    k_pool, k_unpool, k_eps, k_noise = jax.random.split(key, 4)
    B = x.shape[0]

    # ---- encoder layer 1: Conv2d(N_c, K_1, k=8, bias=False) ----
    c1_t, (_, H1, W1) = conv2d_pallas(x, params["enc1_wm"], 8)   # (K1, B*441)
    c1 = nchw_from_lane(c1_t, K_1, B, H1, W1)                    # (B, K1, 21, 21)

    # ---- stochastic pooling ----
    n, m = H1 // P_X, W1 // P_Y
    tiles = c1.reshape(B, K_1, n, P_X, m, P_Y).transpose(0, 1, 2, 4, 3, 5)
    tiles = tiles.reshape(B, K_1, n, m, P_POOL)
    T = B * K_1 * n * m
    Tp = pl.cdiv(T, LANE) * LANE
    xt = jnp.pad(tiles.reshape(T, P_POOL).T, ((0, 0), (0, Tp - T)))  # (9, Tp)
    logits_t, eta_t = pool_mlp_pallas(xt, params["pool_w1"], params["pool_w2"])
    logits = logits_t[:, :T].T.reshape(B, K_1, n, m, P_POOL)
    eta = eta_t[:, :T].T.reshape(B, K_1, n, m, P_POOL)
    # categorical on unnormalized logits == multinomial on softmax probs
    zeta = jax.random.categorical(k_pool, logits, axis=-1)
    pooled = jnp.take_along_axis(tiles, zeta[..., None], axis=-1)[..., 0]
    # etas in the module's loop order (i, j, k) -> (n, m, K1, B, P)
    etas = eta.transpose(2, 3, 1, 0, 4)
    logits_u = logits.transpose(2, 3, 1, 0, 4)

    # ---- encoder layer 2: Conv2d(K_1, K_2, k=4, bias=False) ----
    c2_t, (_, H2, W2) = conv2d_pallas(pooled, params["enc2_wm"], 4)  # (K2, B*16)
    # reorder to (B, K_2*HID) for the fused block-diagonal heads
    x_heads = c2_t.reshape(K_2, B, HID).transpose(1, 0, 2).reshape(B, K_2 * HID)

    # ---- fused per-channel heads: h -> (mean, logvar) -> reparam sample ----
    eps = jax.random.normal(k_eps, (B, K_2 * HID), jnp.float32)
    mean_b, logvar_b, s_b = encoder_heads_pallas(
        x_heads, params["h_wb"], params["h_bb"], params["mu_wb"],
        params["mu_bb"], params["lv_wb"], params["lv_bb"], eps)
    means = mean_b.reshape(B, K_2, HID).transpose(1, 0, 2)       # (K2, B, 16)
    log_vars = logvar_b.reshape(B, K_2, HID).transpose(1, 0, 2)
    s = s_b.reshape(B, K_2, H2, W2)                              # (B, K2, 4, 4)

    # ---- decoder layer 2: ConvTranspose2d(K_2, K_1, k=4) ----
    s2_t, (_, H3, W3) = conv_transpose2d_pallas(s, params["dec2_wm"], 4)
    s2 = nchw_from_lane(s2_t, K_1, B, H3, W3)                    # (B, K1, 7, 7)

    # ---- stochastic unpooling (fresh multinomial draw from the same etas) ----
    zeta_u = jax.random.categorical(k_unpool, logits_u, axis=-1)  # (n, m, K1, B)
    onehot = jax.nn.one_hot(zeta_u, P_POOL, dtype=jnp.float32)
    s_t = s2.transpose(2, 3, 1, 0)                                # (n, m, K1, B)
    tiles_u = onehot * s_t[..., None]                             # (n, m, K1, B, 9)
    s1 = tiles_u.reshape(n, m, K_1, B, P_X, P_Y).transpose(3, 2, 0, 4, 1, 5)
    s1 = s1.reshape(B, K_1, n * P_X, m * P_Y)                     # (B, K1, 21, 21)

    # ---- decoder layer 1: ConvTranspose2d(K_1, N_c, k=8) ----
    out_t, (_, H0, W0) = conv_transpose2d_pallas(s1, params["dec1_wm"], 8)
    recon = nchw_from_lane(out_t, N_C, B, H0, W0)                 # (B, 1, 28, 28)

    # ---- add Gaussian noise with std = (1/alpha) * eye(H, W) ----
    # NOTE: mirrors the PyTorch module exactly (torch.normal with an eye std
    # adds noise only on diagonal pixels; std==0 elsewhere contributes nothing).
    noise_std = (1.0 / params["alpha"]) * jnp.eye(H0, W0, dtype=jnp.float32)
    x_out = recon + jax.random.normal(k_noise, recon.shape, jnp.float32) * noise_std

    return x_out, means, log_vars, etas


# --------------------------------- main --------------------------------------

if __name__ == "__main__":
    key = jax.random.PRNGKey(0)
    k_param, k_x, k_fwd = jax.random.split(key, 3)
    params = init_params(k_param)
    x = jax.random.normal(k_x, (2, N_C, 28, 28), jnp.float32)

    x_out, means, log_vars, etas = dgdn_forward(params, x, k_fwd)
    jax.block_until_ready(x_out)

    assert x_out.shape == (2, N_C, 28, 28)
    assert means.shape == (K_2, 2, HID)
    assert log_vars.shape == (K_2, 2, HID)
    assert etas.shape == (7, 7, K_1, 2, P_POOL)
    assert bool(jnp.all(jnp.isfinite(x_out)))
    print("KERNEL_OK")
</pallas_src>

<mosaic_0001>
module attributes {stable_mosaic.version = 11 : i64} {
  func.func @_conv_matmul_kernel(%arg0: i32, %arg1: memref<4x64xf32, #tpu.memory_space<vmem>>, %arg2: memref<64x896xf32, #tpu.memory_space<vmem>>, %arg3: memref<4x896xf32, #tpu.memory_space<vmem>>) attributes {dimension_semantics = [#tpu.dimension_semantics<arbitrary>], iteration_bounds = array<i64: 1>, scalar_prefetch = 0 : i64, scratch_operands = 0 : i64, tpu.core_type = #tpu.core_type<tc>, window_params = [{pipeline_mode = #tpu.pipeline_mode<synchronous>, transform_indices = @transform_0, window_bounds = array<i64: 4, 64>}, {pipeline_mode = #tpu.pipeline_mode<synchronous>, transform_indices = @transform_1, window_bounds = array<i64: 64, 896>}, {pipeline_mode = #tpu.pipeline_mode<synchronous>, transform_indices = @transform_2, window_bounds = array<i64: 4, 896>}]} {
    %c0 = arith.constant 0 : index
    %c0_0 = arith.constant 0 : index
    %0 = vector.load %arg1[%c0, %c0_0] : memref<4x64xf32, #tpu.memory_space<vmem>>, vector<4x64xf32>
    %c0_1 = arith.constant 0 : index
    %c0_2 = arith.constant 0 : index
    %1 = vector.load %arg2[%c0_1, %c0_2] : memref<64x896xf32, #tpu.memory_space<vmem>>, vector<64x896xf32>
    %cst = arith.constant dense<0.000000e+00> : vector<4x896xf32>
    %2 = tpu.matmul %0, %1, %cst {dimension_numbers = #tpu.dot_dimension_numbers<[1], [0], [0], [1], [0, 0, 1, 1], [], []>} : vector<4x64xf32>, vector<64x896xf32>, vector<4x896xf32> -> vector<4x896xf32>
    %c0_3 = arith.constant 0 : index
    %c0_4 = arith.constant 0 : index
    %3 = vector.load %arg3[%c0_3, %c0_4] : memref<4x896xf32, #tpu.memory_space<vmem>>, vector<4x896xf32>
    tpu.vector_store %arg3[%c0_3, %c0_4], %2 {strides = array<i32>} : memref<4x896xf32, #tpu.memory_space<vmem>>, vector<4x896xf32>,
    return
  }
  func.func @transform_0(%arg0: i32) -> (i32, i32) {
    %c0_i32 = arith.constant 0 : i32
    %c0_i32_0 = arith.constant 0 : i32
    %c0_i32_1 = arith.constant 0 : i32
    return %c0_i32, %c0_i32_0 : i32, i32
  }
  func.func @transform_1(%arg0: i32) -> (i32, i32) {
    %c0_i32 = arith.constant 0 : i32
    %c0_i32_0 = arith.constant 0 : i32
    %c0_i32_1 = arith.constant 0 : i32
    return %c0_i32, %c0_i32_0 : i32, i32
  }
  func.func @transform_2(%arg0: i32) -> (i32, i32) {
    %c0_i32 = arith.constant 0 : i32
    %c0_i32_0 = arith.constant 0 : i32
    %c0_i32_1 = arith.constant 0 : i32
    return %c0_i32, %c0_i32_0 : i32, i32
  }
}

module attributes {stable_mosaic.version = 11 : i64} {
  func.func @_pool_mlp_kernel(%arg0: i32, %arg1: memref<9x512xf32, #tpu.memory_space<vmem>>, %arg2: memref<9x9xf32, #tpu.memory_space<vmem>>, %arg3: memref<9x9xf32, #tpu.memory_space<vmem>>, %arg4: memref<9x512xf32, #tpu.memory_space<vmem>>, %arg5: memref<9x512xf32, #tpu.memory_space<vmem>>) attributes {dimension_semantics = [#tpu.dimension_semantics<arbitrary>], iteration_bounds = array<i64: 1>, scalar_prefetch = 0 : i64, scratch_operands = 0 : i64, tpu.core_type = #tpu.core_type<tc>, window_params = [{pipeline_mode = #tpu.pipeline_mode<synchronous>, transform_indices = @transform_0, window_bounds = array<i64: 9, 512>}, {pipeline_mode = #tpu.pipeline_mode<synchronous>, transform_indices = @transform_1, window_bounds = array<i64: 9, 9>}, {pipeline_mode = #tpu.pipeline_mode<synchronous>, transform_indices = @transform_2, window_bounds = array<i64: 9, 9>}, {pipeline_mode = #tpu.pipeline_mode<synchronous>, transform_indices = @transform_3, window_bounds = array<i64: 9, 512>}, {pipeline_mode = #tpu.pipeline_mode<synchronous>, transform_indices = @transform_4, window_bounds = array<i64: 9, 512>}]} {
    %c0 = arith.constant 0 : index
    %c0_0 = arith.constant 0 : index
    %0 = vector.load %arg2[%c0, %c0_0] : memref<9x9xf32, #tpu.memory_space<vmem>>, vector<9x9xf32>
    %c0_1 = arith.constant 0 : index
    %c0_2 = arith.constant 0 : index
    %1 = vector.load %arg1[%c0_1, %c0_2] : memref<9x512xf32, #tpu.memory_space<vmem>>, vector<9x512xf32>
    %cst = arith.constant dense<0.000000e+00> : vector<9x512xf32>
    %2 = tpu.matmul %0, %1, %cst {dimension_numbers = #tpu.dot_dimension_numbers<[1], [0], [0], [1], [0, 0, 1, 1], [], []>} : vector<9x9xf32>, vector<9x512xf32>, vector<9x512xf32> -> vector<9x512xf32>
    %3 = math.tanh %2 : vector<9x512xf32>
    %c0_3 = arith.constant 0 : index
    %c0_4 = arith.constant 0 : index
    %4 = vector.load %arg3[%c0_3, %c0_4] : memref<9x9xf32, #tpu.memory_space<vmem>>, vector<9x9xf32>
    %cst_5 = arith.constant dense<0.000000e+00> : vector<9x512xf32>
    %5 = tpu.matmul %4, %3, %cst_5 {dimension_numbers = #tpu.dot_dimension_numbers<[1], [0], [0], [1], [0, 0, 1, 1], [], []>} : vector<9x9xf32>, vector<9x512xf32>, vector<9x512xf32> -> vector<9x512xf32>
    %c0_6 = arith.constant 0 : index
    %c0_7 = arith.constant 0 : index
    %6 = vector.load %arg4[%c0_6, %c0_7] : memref<9x512xf32, #tpu.memory_space<vmem>>, vector<9x512xf32>
    tpu.vector_store %arg4[%c0_6, %c0_7], %5 {strides = array<i32>} : memref<9x512xf32, #tpu.memory_space<vmem>>, vector<9x512xf32>,
    %cst_8 = arith.constant dense<0xFF800000> : vector<512xf32>
    %7 = vector.multi_reduction <maximumf>, %5, %cst_8 [0] : vector<9x512xf32> to vector<512xf32>
    %8 = vector.shape_cast %7 : vector<512xf32> to vector<1x512xf32>
    %9 = vector.broadcast %8 : vector<1x512xf32> to vector<9x512xf32>
    %10 = arith.subf %5, %9 : vector<9x512xf32>
    %11 = math.exp %10 : vector<9x512xf32>
    %cst_9 = arith.constant dense<0.000000e+00> : vector<512xf32>
    %12 = vector.multi_reduction <add>, %11, %cst_9 [0] : vector<9x512xf32> to vector<512xf32>
    %13 = vector.shape_cast %12 : vector<512xf32> to vector<1x512xf32>
    %14 = vector.broadcast %13 : vector<1x512xf32> to vector<9x512xf32>
    %15 = arith.divf %11, %14 : vector<9x512xf32>
    %c0_10 = arith.constant 0 : index
    %c0_11 = arith.constant 0 : index
    %16 = vector.load %arg5[%c0_10, %c0_11] : memref<9x512xf32, #tpu.memory_space<vmem>>, vector<9x512xf32>
    tpu.vector_store %arg5[%c0_10, %c0_11], %15 {strides = array<i32>} : memref<9x512xf32, #tpu.memory_space<vmem>>, vector<9x512xf32>,
    return
  }
  func.func @transform_0(%arg0: i32) -> (i32, i32) {
    %c0_i32 = arith.constant 0 : i32
    %c0_i32_0 = arith.constant 0 : i32
    %c0_i32_1 = arith.constant 0 : i32
    return %c0_i32, %c0_i32_0 : i32, i32
  }
  func.func @transform_1(%arg0: i32) -> (i32, i32) {
    %c0_i32 = arith.constant 0 : i32
    %c0_i32_0 = arith.constant 0 : i32
    %c0_i32_1 = arith.constant 0 : i32
    return %c0_i32, %c0_i32_0 : i32, i32
  }
  func.func @transform_2(%arg0: i32) -> (i32, i32) {
    %c0_i32 = arith.constant 0 : i32
    %c0_i32_0 = arith.constant 0 : i32
    %c0_i32_1 = arith.constant 0 : i32
    return %c0_i32, %c0_i32_0 : i32, i32
  }
  func.func @transform_3(%arg0: i32) -> (i32, i32) {
    %c0_i32 = arith.constant 0 : i32
    %c0_i32_0 = arith.constant 0 : i32
    %c0_i32_1 = arith.constant 0 : i32
    return %c0_i32, %c0_i32_0 : i32, i32
  }
  func.func @transform_4(%arg0: i32) -> (i32, i32) {
    %c0_i32 = arith.constant 0 : i32
    %c0_i32_0 = arith.constant 0 : i32
    %c0_i32_1 = arith.constant 0 : i32
    return %c0_i32, %c0_i32_0 : i32, i32
  }
}

module attributes {stable_mosaic.version = 11 : i64} {
  func.func @_conv_matmul_kernel(%arg0: i32, %arg1: memref<8x64xf32, #tpu.memory_space<vmem>>, %arg2: memref<64x128xf32, #tpu.memory_space<vmem>>, %arg3: memref<8x128xf32, #tpu.memory_space<vmem>>) attributes {dimension_semantics = [#tpu.dimension_semantics<arbitrary>], iteration_bounds = array<i64: 1>, scalar_prefetch = 0 : i64, scratch_operands = 0 : i64, tpu.core_type = #tpu.core_type<tc>, window_params = [{pipeline_mode = #tpu.pipeline_mode<synchronous>, transform_indices = @transform_0, window_bounds = array<i64: 8, 64>}, {pipeline_mode = #tpu.pipeline_mode<synchronous>, transform_indices = @transform_1, window_bounds = array<i64: 64, 128>}, {pipeline_mode = #tpu.pipeline_mode<synchronous>, transform_indices = @transform_2, window_bounds = array<i64: 8, 128>}]} {
    %c0 = arith.constant 0 : index
    %c0_0 = arith.constant 0 : index
    %0 = vector.load %arg1[%c0, %c0_0] : memref<8x64xf32, #tpu.memory_space<vmem>>, vector<8x64xf32>
    %c0_1 = arith.constant 0 : index
    %c0_2 = arith.constant 0 : index
    %1 = vector.load %arg2[%c0_1, %c0_2] : memref<64x128xf32, #tpu.memory_space<vmem>>, vector<64x128xf32>
    %cst = arith.constant dense<0.000000e+00> : vector<8x128xf32>
    %2 = tpu.matmul %0, %1, %cst {dimension_numbers = #tpu.dot_dimension_numbers<[1], [0], [0], [1], [0, 0, 1, 1], [], []>} : vector<8x64xf32>, vector<64x128xf32>, vector<8x128xf32> -> vector<8x128xf32>
    %c0_3 = arith.constant 0 : index
    %c0_4 = arith.constant 0 : index
    %3 = vector.load %arg3[%c0_3, %c0_4] : memref<8x128xf32, #tpu.memory_space<vmem>>, vector<8x128xf32>
    tpu.vector_store %arg3[%c0_3, %c0_4], %2 {strides = array<i32>} : memref<8x128xf32, #tpu.memory_space<vmem>>, vector<8x128xf32>,
    return
  }
  func.func @transform_0(%arg0: i32) -> (i32, i32) {
    %c0_i32 = arith.constant 0 : i32
    %c0_i32_0 = arith.constant 0 : i32
    %c0_i32_1 = arith.constant 0 : i32
    return %c0_i32, %c0_i32_0 : i32, i32
  }
  func.func @transform_1(%arg0: i32) -> (i32, i32) {
    %c0_i32 = arith.constant 0 : i32
    %c0_i32_0 = arith.constant 0 : i32
    %c0_i32_1 = arith.constant 0 : i32
    return %c0_i32, %c0_i32_0 : i32, i32
  }
  func.func @transform_2(%arg0: i32) -> (i32, i32) {
    %c0_i32 = arith.constant 0 : i32
    %c0_i32_0 = arith.constant 0 : i32
    %c0_i32_1 = arith.constant 0 : i32
    return %c0_i32, %c0_i32_0 : i32, i32
  }
}

module attributes {stable_mosaic.version = 11 : i64} {
  func.func @_heads_kernel(%arg0: i32, %arg1: memref<2x128xf32, #tpu.memory_space<vmem>>, %arg2: memref<128x128xf32, #tpu.memory_space<vmem>>, %arg3: memref<1x128xf32, #tpu.memory_space<vmem>>, %arg4: memref<128x128xf32, #tpu.memory_space<vmem>>, %arg5: memref<1x128xf32, #tpu.memory_space<vmem>>, %arg6: memref<128x128xf32, #tpu.memory_space<vmem>>, %arg7: memref<1x128xf32, #tpu.memory_space<vmem>>, %arg8: memref<2x128xf32, #tpu.memory_space<vmem>>, %arg9: memref<2x128xf32, #tpu.memory_space<vmem>>, %arg10: memref<2x128xf32, #tpu.memory_space<vmem>>, %arg11: memref<2x128xf32, #tpu.memory_space<vmem>>) attributes {dimension_semantics = [#tpu.dimension_semantics<arbitrary>], iteration_bounds = array<i64: 1>, scalar_prefetch = 0 : i64, scratch_operands = 0 : i64, tpu.core_type = #tpu.core_type<tc>, window_params = [{pipeline_mode = #tpu.pipeline_mode<synchronous>, transform_indices = @transform_0, window_bounds = array<i64: 2, 128>}, {pipeline_mode = #tpu.pipeline_mode<synchronous>, transform_indices = @transform_1, window_bounds = array<i64: 128, 128>}, {pipeline_mode = #tpu.pipeline_mode<synchronous>, transform_indices = @transform_2, window_bounds = array<i64: 1, 128>}, {pipeline_mode = #tpu.pipeline_mode<synchronous>, transform_indices = @transform_3, window_bounds = array<i64: 128, 128>}, {pipeline_mode = #tpu.pipeline_mode<synchronous>, transform_indices = @transform_4, window_bounds = array<i64: 1, 128>}, {pipeline_mode = #tpu.pipeline_mode<synchronous>, transform_indices = @transform_5, window_bounds = array<i64: 128, 128>}, {pipeline_mode = #tpu.pipeline_mode<synchronous>, transform_indices = @transform_6, window_bounds = array<i64: 1, 128>}, {pipeline_mode = #tpu.pipeline_mode<synchronous>, transform_indices = @transform_7, window_bounds = array<i64: 2, 128>}, {pipeline_mode = #tpu.pipeline_mode<synchronous>, transform_indices = @transform_8, window_bounds = array<i64: 2, 128>}, {pipeline_mode = #tpu.pipeline_mode<synchronous>, transform_indices = @transform_9, window_bounds = array<i64: 2, 128>}, {pipeline_mode = #tpu.pipeline_mode<synchronous>, transform_indices = @transform_10, window_bounds = array<i64: 2, 128>}]} {
    %c0 = arith.constant 0 : index
    %c0_0 = arith.constant 0 : index
    %0 = vector.load %arg1[%c0, %c0_0] : memref<2x128xf32, #tpu.memory_space<vmem>>, vector<2x128xf32>
    %c0_1 = arith.constant 0 : index
    %c0_2 = arith.constant 0 : index
    %1 = vector.load %arg2[%c0_1, %c0_2] : memref<128x128xf32, #tpu.memory_space<vmem>>, vector<128x128xf32>
    %cst = arith.constant dense<0.000000e+00> : vector<2x128xf32>
    %2 = tpu.matmul %0, %1, %cst {dimension_numbers = #tpu.dot_dimension_numbers<[1], [0], [0], [1], [0, 0, 1, 1], [], []>} : vector<2x128xf32>, vector<128x128xf32>, vector<2x128xf32> -> vector<2x128xf32>
    %c0_3 = arith.constant 0 : index
    %c0_4 = arith.constant 0 : index
    %3 = vector.load %arg3[%c0_3, %c0_4] : memref<1x128xf32, #tpu.memory_space<vmem>>, vector<1x128xf32>
    %4 = vector.broadcast %3 : vector<1x128xf32> to vector<2x128xf32>
    %5 = arith.addf %2, %4 : vector<2x128xf32>
    %6 = math.tanh %5 : vector<2x128xf32>
    %c0_5 = arith.constant 0 : index
    %c0_6 = arith.constant 0 : index
    %7 = vector.load %arg4[%c0_5, %c0_6] : memref<128x128xf32, #tpu.memory_space<vmem>>, vector<128x128xf32>
    %cst_7 = arith.constant dense<0.000000e+00> : vector<2x128xf32>
    %8 = tpu.matmul %6, %7, %cst_7 {dimension_numbers = #tpu.dot_dimension_numbers<[1], [0], [0], [1], [0, 0, 1, 1], [], []>} : vector<2x128xf32>, vector<128x128xf32>, vector<2x128xf32> -> vector<2x128xf32>
    %c0_8 = arith.constant 0 : index
    %c0_9 = arith.constant 0 : index
    %9 = vector.load %arg5[%c0_8, %c0_9] : memref<1x128xf32, #tpu.memory_space<vmem>>, vector<1x128xf32>
    %10 = vector.broadcast %9 : vector<1x128xf32> to vector<2x128xf32>
    %11 = arith.addf %8, %10 : vector<2x128xf32>
    %c0_10 = arith.constant 0 : index
    %c0_11 = arith.constant 0 : index
    %12 = vector.load %arg6[%c0_10, %c0_11] : memref<128x128xf32, #tpu.memory_space<vmem>>, vector<128x128xf32>
    %cst_12 = arith.constant dense<0.000000e+00> : vector<2x128xf32>
    %13 = tpu.matmul %6, %12, %cst_12 {dimension_numbers = #tpu.dot_dimension_numbers<[1], [0], [0], [1], [0, 0, 1, 1], [], []>} : vector<2x128xf32>, vector<128x128xf32>, vector<2x128xf32> -> vector<2x128xf32>
    %c0_13 = arith.constant 0 : index
    %c0_14 = arith.constant 0 : index
    %14 = vector.load %arg7[%c0_13, %c0_14] : memref<1x128xf32, #tpu.memory_space<vmem>>, vector<1x128xf32>
    %15 = vector.broadcast %14 : vector<1x128xf32> to vector<2x128xf32>
    %16 = arith.addf %13, %15 : vector<2x128xf32>
    %c0_15 = arith.constant 0 : index
    %c0_16 = arith.constant 0 : index
    %17 = vector.load %arg9[%c0_15, %c0_16] : memref<2x128xf32, #tpu.memory_space<vmem>>, vector<2x128xf32>
    tpu.vector_store %arg9[%c0_15, %c0_16], %11 {strides = array<i32>} : memref<2x128xf32, #tpu.memory_space<vmem>>, vector<2x128xf32>,
    %c0_17 = arith.constant 0 : index
    %c0_18 = arith.constant 0 : index
    %18 = vector.load %arg10[%c0_17, %c0_18] : memref<2x128xf32, #tpu.memory_space<vmem>>, vector<2x128xf32>
    tpu.vector_store %arg10[%c0_17, %c0_18], %16 {strides = array<i32>} : memref<2x128xf32, #tpu.memory_space<vmem>>, vector<2x128xf32>,
    %cst_19 = arith.constant 5.000000e-01 : f32
    %19 = vector.broadcast %cst_19 : f32 to vector<2x128xf32>
    %20 = arith.mulf %19, %16 : vector<2x128xf32>
    %21 = math.exp %20 : vector<2x128xf32>
    %c0_20 = arith.constant 0 : index
    %c0_21 = arith.constant 0 : index
    %22 = vector.load %arg8[%c0_20, %c0_21] : memref<2x128xf32, #tpu.memory_space<vmem>>, vector<2x128xf32>
    %23 = arith.mulf %21, %22 : vector<2x128xf32>
    %24 = arith.addf %11, %23 : vector<2x128xf32>
    %c0_22 = arith.constant 0 : index
    %c0_23 = arith.constant 0 : index
    %25 = vector.load %arg11[%c0_22, %c0_23] : memref<2x128xf32, #tpu.memory_space<vmem>>, vector<2x128xf32>
    tpu.vector_store %arg11[%c0_22, %c0_23], %24 {strides = array<i32>} : memref<2x128xf32, #tpu.memory_space<vmem>>, vector<2x128xf32>,
    return
  }
  func.func @transform_0(%arg0: i32) -> (i32, i32) {
    %c0_i32 = arith.constant 0 : i32
    %c0_i32_0 = arith.constant 0 : i32
    %c0_i32_1 = arith.constant 0 : i32
    return %c0_i32, %c0_i32_0 : i32, i32
  }
  func.func @transform_1(%arg0: i32) -> (i32, i32) {
    %c0_i32 = arith.constant 0 : i32
    %c0_i32_0 = arith.constant 0 : i32
    %c0_i32_1 = arith.constant 0 : i32
    return %c0_i32, %c0_i32_0 : i32, i32
  }
  func.func @transform_2(%arg0: i32) -> (i32, i32) {
    %c0_i32 = arith.constant 0 : i32
    %c0_i32_0 = arith.constant 0 : i32
    %c0_i32_1 = arith.constant 0 : i32
    return %c0_i32, %c0_i32_0 : i32, i32
  }
  func.func @transform_3(%arg0: i32) -> (i32, i32) {
    %c0_i32 = arith.constant 0 : i32
    %c0_i32_0 = arith.constant 0 : i32
    %c0_i32_1 = arith.constant 0 : i32
    return %c0_i32, %c0_i32_0 : i32, i32
  }
  func.func @transform_4(%arg0: i32) -> (i32, i32) {
    %c0_i32 = arith.constant 0 : i32
    %c0_i32_0 = arith.constant 0 : i32
    %c0_i32_1 = arith.constant 0 : i32
    return %c0_i32, %c0_i32_0 : i32, i32
  }
  func.func @transform_5(%arg0: i32) -> (i32, i32) {
    %c0_i32 = arith.constant 0 : i32
    %c0_i32_0 = arith.constant 0 : i32
    %c0_i32_1 = arith.constant 0 : i32
    return %c0_i32, %c0_i32_0 : i32, i32
  }
  func.func @transform_6(%arg0: i32) -> (i32, i32) {
    %c0_i32 = arith.constant 0 : i32
    %c0_i32_0 = arith.constant 0 : i32
    %c0_i32_1 = arith.constant 0 : i32
    return %c0_i32, %c0_i32_0 : i32, i32
  }
  func.func @transform_7(%arg0: i32) -> (i32, i32) {
    %c0_i32 = arith.constant 0 : i32
    %c0_i32_0 = arith.constant 0 : i32
    %c0_i32_1 = arith.constant 0 : i32
    return %c0_i32, %c0_i32_0 : i32, i32
  }
  func.func @transform_8(%arg0: i32) -> (i32, i32) {
    %c0_i32 = arith.constant 0 : i32
    %c0_i32_0 = arith.constant 0 : i32
    %c0_i32_1 = arith.constant 0 : i32
    return %c0_i32, %c0_i32_0 : i32, i32
  }
  func.func @transform_9(%arg0: i32) -> (i32, i32) {
    %c0_i32 = arith.constant 0 : i32
    %c0_i32_0 = arith.constant 0 : i32
    %c0_i32_1 = arith.constant 0 : i32
    return %c0_i32, %c0_i32_0 : i32, i32
  }
  func.func @transform_10(%arg0: i32) -> (i32, i32) {
    %c0_i32 = arith.constant 0 : i32
    %c0_i32_0 = arith.constant 0 : i32
    %c0_i32_1 = arith.constant 0 : i32
    return %c0_i32, %c0_i32_0 : i32, i32
  }
}

module attributes {stable_mosaic.version = 11 : i64} {
  func.func @_conv_matmul_kernel(%arg0: i32, %arg1: memref<4x128xf32, #tpu.memory_space<vmem>>, %arg2: memref<128x128xf32, #tpu.memory_space<vmem>>, %arg3: memref<4x128xf32, #tpu.memory_space<vmem>>) attributes {dimension_semantics = [#tpu.dimension_semantics<arbitrary>], iteration_bounds = array<i64: 1>, scalar_prefetch = 0 : i64, scratch_operands = 0 : i64, tpu.core_type = #tpu.core_type<tc>, window_params = [{pipeline_mode = #tpu.pipeline_mode<synchronous>, transform_indices = @transform_0, window_bounds = array<i64: 4, 128>}, {pipeline_mode = #tpu.pipeline_mode<synchronous>, transform_indices = @transform_1, window_bounds = array<i64: 128, 128>}, {pipeline_mode = #tpu.pipeline_mode<synchronous>, transform_indices = @transform_2, window_bounds = array<i64: 4, 128>}]} {
    %c0 = arith.constant 0 : index
    %c0_0 = arith.constant 0 : index
    %0 = vector.load %arg1[%c0, %c0_0] : memref<4x128xf32, #tpu.memory_space<vmem>>, vector<4x128xf32>
    %c0_1 = arith.constant 0 : index
    %c0_2 = arith.constant 0 : index
    %1 = vector.load %arg2[%c0_1, %c0_2] : memref<128x128xf32, #tpu.memory_space<vmem>>, vector<128x128xf32>
    %cst = arith.constant dense<0.000000e+00> : vector<4x128xf32>
    %2 = tpu.matmul %0, %1, %cst {dimension_numbers = #tpu.dot_dimension_numbers<[1], [0], [0], [1], [0, 0, 1, 1], [], []>} : vector<4x128xf32>, vector<128x128xf32>, vector<4x128xf32> -> vector<4x128xf32>
    %c0_3 = arith.constant 0 : index
    %c0_4 = arith.constant 0 : index
    %3 = vector.load %arg3[%c0_3, %c0_4] : memref<4x128xf32, #tpu.memory_space<vmem>>, vector<4x128xf32>
    tpu.vector_store %arg3[%c0_3, %c0_4], %2 {strides = array<i32>} : memref<4x128xf32, #tpu.memory_space<vmem>>, vector<4x128xf32>,
    return
  }
  func.func @transform_0(%arg0: i32) -> (i32, i32) {
    %c0_i32 = arith.constant 0 : i32
    %c0_i32_0 = arith.constant 0 : i32
    %c0_i32_1 = arith.constant 0 : i32
    return %c0_i32, %c0_i32_0 : i32, i32
  }
  func.func @transform_1(%arg0: i32) -> (i32, i32) {
    %c0_i32 = arith.constant 0 : i32
    %c0_i32_0 = arith.constant 0 : i32
    %c0_i32_1 = arith.constant 0 : i32
    return %c0_i32, %c0_i32_0 : i32, i32
  }
  func.func @transform_2(%arg0: i32) -> (i32, i32) {
    %c0_i32 = arith.constant 0 : i32
    %c0_i32_0 = arith.constant 0 : i32
    %c0_i32_1 = arith.constant 0 : i32
    return %c0_i32, %c0_i32_0 : i32, i32
  }
}

module attributes {stable_mosaic.version = 11 : i64} {
  func.func @_conv_matmul_kernel(%arg0: i32, %arg1: memref<1x256xf32, #tpu.memory_space<vmem>>, %arg2: memref<256x1664xf32, #tpu.memory_space<vmem>>, %arg3: memref<1x1664xf32, #tpu.memory_space<vmem>>) attributes {dimension_semantics = [#tpu.dimension_semantics<arbitrary>], iteration_bounds = array<i64: 1>, scalar_prefetch = 0 : i64, scratch_operands = 0 : i64, tpu.core_type = #tpu.core_type<tc>, window_params = [{pipeline_mode = #tpu.pipeline_mode<synchronous>, transform_indices = @transform_0, window_bounds = array<i64: 1, 256>}, {pipeline_mode = #tpu.pipeline_mode<synchronous>, transform_indices = @transform_1, window_bounds = array<i64: 256, 1664>}, {pipeline_mode = #tpu.pipeline_mode<synchronous>, transform_indices = @transform_2, window_bounds = array<i64: 1, 1664>}]} {
    %c0 = arith.constant 0 : index
    %c0_0 = arith.constant 0 : index
    %0 = vector.load %arg1[%c0, %c0_0] : memref<1x256xf32, #tpu.memory_space<vmem>>, vector<1x256xf32>
    %c0_1 = arith.constant 0 : index
    %c0_2 = arith.constant 0 : index
    %1 = vector.load %arg2[%c0_1, %c0_2] : memref<256x1664xf32, #tpu.memory_space<vmem>>, vector<256x1664xf32>
    %cst = arith.constant dense<0.000000e+00> : vector<1x1664xf32>
    %2 = tpu.matmul %0, %1, %cst {dimension_numbers = #tpu.dot_dimension_numbers<[1], [0], [0], [1], [0, 0, 1, 1], [], []>} : vector<1x256xf32>, vector<256x1664xf32>, vector<1x1664xf32> -> vector<1x1664xf32>
    %c0_3 = arith.constant 0 : index
    %c0_4 = arith.constant 0 : index
    %3 = vector.load %arg3[%c0_3, %c0_4] : memref<1x1664xf32, #tpu.memory_space<vmem>>, vector<1x1664xf32>
    tpu.vector_store %arg3[%c0_3, %c0_4], %2 {strides = array<i32>} : memref<1x1664xf32, #tpu.memory_space<vmem>>, vector<1x1664xf32>,
    return
  }
  func.func @transform_0(%arg0: i32) -> (i32, i32) {
    %c0_i32 = arith.constant 0 : i32
    %c0_i32_0 = arith.constant 0 : i32
    %c0_i32_1 = arith.constant 0 : i32
    return %c0_i32, %c0_i32_0 : i32, i32
  }
  func.func @transform_1(%arg0: i32) -> (i32, i32) {
    %c0_i32 = arith.constant 0 : i32
    %c0_i32_0 = arith.constant 0 : i32
    %c0_i32_1 = arith.constant 0 : i32
    return %c0_i32, %c0_i32_0 : i32, i32
  }
  func.func @transform_2(%arg0: i32) -> (i32, i32) {
    %c0_i32 = arith.constant 0 : i32
    %c0_i32_0 = arith.constant 0 : i32
    %c0_i32_1 = arith.constant 0 : i32
    return %c0_i32, %c0_i32_0 : i32, i32
  }
}

</mosaic_0001>

<bundles_post_ra>
// kernel: dgdn_forward.8
= control target key start
LH: loop header
LB: loop body
LE: loop exit
PB: predicated region body
PF: predicated region fallthrough
CT: control target
= control target key end

     0   :  { %v470_v3 = vmov 0.0   ;;  %vm68_vm0 = vcmask 523264   ;;  %vm472_vm1 = vmmov 0   ;;  %s679_s1 = inlined_call_operand.vmem [shape: f32[64,896], index: 1, kind: input, shape index: {}]   ;;  %s680_s0 = inlined_call_operand.vmem [shape: f32[4,64], index: 0, kind: input, shape index: {}]   ;;  %s681_s2 = inlined_call_operand.vmem [shape: f32[4,896], index: 2, kind: output, shape index: {}]  }
   0x1   :  { %v13_v0 = vld [vmem:[%s679_s1 + $0x8] sm:$0xff]  ;;  %v20_v1 = vld [vmem:[%s679_s1 + $0x40] sm:$0xff]  ;;  %136 = vmatprep.mubr.f32.mxu0 %v470_v3  ;;  %207 = vmatprep.mubr.f32.mxu1 %v470_v3  ;;  %v19_v5 = vld [vmem:[%s679_s1 + $0x38] sm:$0xff] }
   0x2   :  { %v12_v2 = vld [vmem:[%s679_s1] sm:$0xff]  ;;  %v407_v4 = vpack.c.bf16 %v20_v1, %v13_v0  ;;  %v15_v6 = vld [vmem:[%s679_s1 + $0x18] sm:$0xff]  ;;  %v22_v7 = vld [vmem:[%s679_s1 + $0x50] sm:$0xff]  ;;  %v471_v1 = vmov 0.0|0.0  }
   0x3   :  { %v409_v8 = vpack.c.bf16 %v19_v5, %v12_v2  ;;  %v423_v9 = vpack.c.bf16 %v22_v7, %v15_v6  ;;  %v14_v10 = vld [vmem:[%s679_s1 + $0x10] sm:$0xff]  ;;  %v21_v11 = vld [vmem:[%s679_s1 + $0x48] sm:$0xff]  ;;  %v27_v12 = vld [vmem:[%s679_s1 + $0x78] sm:$0xff] }
   0x4   :  { %408 = vmatprep.subr.bf16.mxu0 %v407_v4  ;;  %v425_v13 = vpack.c.bf16 %v21_v11, %v14_v10  ;;  %v34_v14 = vld [vmem:[%s679_s1 + $0xb0] sm:$0xff]  ;;  %v33_v16 = vld [vmem:[%s679_s1 + $0xa8] sm:$0xff]  ;;  %v36_v20 = vld [vmem:[%s679_s1 + $0xc0] sm:$0xff] }
   0x5   :  { %v26_v15 = vld [vmem:[%s679_s1 + $0x70] sm:$0xff]  ;;  %410 = vmatpush1.bf16.msra.mxu0 %v409_v8  ;;  %424 = vmatprep.subr.bf16.mxu1 %v423_v9  ;;  %v411_v17 = vpack.c.bf16 %v34_v14, %v27_v12  ;;  %v29_v19 = vld [vmem:[%s679_s1 + $0x88] sm:$0xff]  ;;  %v28_v21 = vld [vmem:[%s679_s1 + $0x80] sm:$0xff] }
   0x6   :  { %v413_v18 = vpack.c.bf16 %v33_v16, %v26_v15  ;;  %426 = vmatpush1.bf16.msra.mxu1 %v425_v13  ;;  %v427_v22 = vpack.c.bf16 %v36_v20, %v29_v19  ;;  %v35_v23 = vld [vmem:[%s679_s1 + $0xb8] sm:$0xff]  ;;  %v41_v24 = vld [vmem:[%s679_s1 + $0xe8] sm:$0xff]  ;;  %v48_v25 = vld [vmem:[%s679_s1 + $0x120] sm:$0xff] }
   0x7   :  { %412 = vmatprep.subr.bf16.mxu0 %v411_v17  ;;  %v429_v26 = vpack.c.bf16 %v35_v23, %v28_v21  ;;  %v415_v27 = vpack.c.bf16 %v48_v25, %v41_v24  ;;  %v40_v28 = vld [vmem:[%s679_s1 + $0xe0] sm:$0xff]  ;;  %v47_v29 = vld [vmem:[%s679_s1 + $0x118] sm:$0xff]  ;;  %v50_v31 = vld [vmem:[%s679_s1 + $0x130] sm:$0xff] }
   0x8   :  { %v43_v30 = vld [vmem:[%s679_s1 + $0xf8] sm:$0xff]  ;;  %428 = vmatprep.subr.bf16.mxu1 %v427_v22  ;;  %v42_v32 = vld [vmem:[%s679_s1 + $0xf0] sm:$0xff]  ;;  %v49_v33 = vld [vmem:[%s679_s1 + $0x128] sm:$0xff]  ;;  %v417_v34 = vpack.c.bf16 %v47_v29, %v40_v28 }
   0x9   :  { %414 = vmatpush1.bf16.msra.mxu0 %v413_v18  ;;  %v431_v35 = vpack.c.bf16 %v50_v31, %v43_v30  ;;  %v55_v36 = vld [vmem:[%s679_s1 + $0x158] sm:$0xff]  ;;  %v62_v37 = vld [vmem:[%s679_s1 + $0x190] sm:$0xff]  ;;  %v433_v39 = vpack.c.bf16 %v49_v33, %v42_v32  ;;  %v61_v41 = vld [vmem:[%s679_s1 + $0x188] sm:$0xff] }
   0xa   :  { %v54_v38 = vld [vmem:[%s679_s1 + $0x150] sm:$0xff]  ;;  %430 = vmatpush1.bf16.msra.mxu1 %v429_v26  ;;  %416 = vmatprep.subr.bf16.mxu0 %v415_v27  ;;  %v419_v40 = vpack.c.bf16 %v62_v37, %v55_v36  ;;  %v57_v42 = vld [vmem:[%s679_s1 + $0x168] sm:$0xff]  ;;  %v64_v43 = vld [vmem:[%s679_s1 + $0x1a0] sm:$0xff] }
   0xb   :  { %432 = vmatprep.subr.bf16.mxu1 %v431_v35  ;;  %v435_v44 = vpack.c.bf16 %v64_v43, %v57_v42  ;;  %v56_v45 = vld [vmem:[%s679_s1 + $0x160] sm:$0xff]  ;;  %v63_v46 = vld [vmem:[%s679_s1 + $0x198] sm:$0xff]  ;;  %v17_v47 = vld [vmem:[%s679_s1 + $0x28] sm:$0xff]  ;;  %v421_v49 = vpack.c.bf16 %v61_v41, %v54_v38 }
   0xc   :  { %v24_v48 = vld [vmem:[%s679_s1 + $0x60] sm:$0xff]  ;;  %v437_v50 = vpack.c.bf16 %v63_v46, %v56_v45  ;;  %v23_v53 = vld [vmem:[%s679_s1 + $0x58] sm:$0xff]  ;;  %v18_v54 = vld [vmem:[%s679_s1 + $0x30] sm:$0xff] }
   0xd   :  { %418 = vmatpush1.bf16.msra.mxu0 %v417_v34  ;;  %v439_v51 = vpack.c.bf16 %v24_v48, %v17_v47  ;;  %v16_v52 = vld [vmem:[%s679_s1 + $0x20] sm:$0xff]  ;;  %v25_v55 = vld [vmem:[%s679_s1 + $0x68] sm:$0xff]  ;;  %v31_v56 = vld [vmem:[%s679_s1 + $0x98] sm:$0xff] }
   0xe   :  { %434 = vmatpush1.bf16.msra.mxu1 %v433_v39  ;;  %420 = vmatprep.subr.bf16.mxu0 %v419_v40  ;;  %v38_v57 = vld [vmem:[%s679_s1 + $0xd0] sm:$0xff]  ;;  %v11_v58 = vld [vmem:[%s680_s0] sm:$0xf]  ;;  %v441_v59 = vpack.c.bf16 %v23_v53, %v16_v52  ;;  %v456_v60 = vpack.c.bf16 %v25_v55, %v18_v54  ;;  %v37_v63 = vld [vmem:[%s679_s1 + $0xc8] sm:$0xff] }
   0xf   :  { %436 = vmatprep.subr.bf16.mxu1 %v435_v44  ;;  %v443_v61 = vpack.c.bf16 %v38_v57, %v31_v56  ;;  %v30_v62 = vld [vmem:[%s679_s1 + $0x90] sm:$0xff]  ;;  %v32_v0 = vld [vmem:[%s679_s1 + $0xa0] sm:$0xff]  ;;  %v39_v2 = vld [vmem:[%s679_s1 + $0xd8] sm:$0xff] }
  0x10   :  { %v45_v4 = vld [vmem:[%s679_s1 + $0x108] sm:$0xff]  ;;  %v52_v5 = vld [vmem:[%s679_s1 + $0x140] sm:$0xff]  ;;  %v445_v6 = vpack.c.bf16 %v37_v63, %v30_v62  ;;  %v459_v7 = vpack.c.bf16 %v39_v2, %v32_v0  ;;  %v51_v10 = vld [vmem:[%s679_s1 + $0x138] sm:$0xff] }
  0x11   :  { %422 = vmatpush1.bf16.msra.mxu0 %v421_v49  ;;  %v447_v8 = vpack.c.bf16 %v52_v5, %v45_v4  ;;  %v44_v9 = vld [vmem:[%s679_s1 + $0x100] sm:$0xff]  ;;  %v46_v11 = vld [vmem:[%s679_s1 + $0x110] sm:$0xff]  ;;  %v53_v12 = vld [vmem:[%s679_s1 + $0x148] sm:$0xff] }
  0x12   :  { %438 = vmatpush1.bf16.msra.mxu1 %v437_v50  ;;  %440 = vmatprep.subr.bf16.mxu0 %v439_v51  ;;  %v59_v13 = vld [vmem:[%s679_s1 + $0x178] sm:$0xff]  ;;  %v66_v14 = vld [vmem:[%s679_s1 + $0x1b0] sm:$0xff]  ;;  %v449_v15 = vpack.c.bf16 %v51_v10, %v44_v9  ;;  %v462_v16 = vpack.c.bf16 %v53_v12, %v46_v11  ;;  %v65_v19 = vld [vmem:[%s679_s1 + $0x1a8] sm:$0xff] }
  0x13   :  { %455 = vmatprep.subr.bf16.mxu1 %v471_v1  ;;  %v451_v17 = vpack.c.bf16 %v66_v14, %v59_v13  ;;  %v58_v18 = vld [vmem:[%s679_s1 + $0x170] sm:$0xff]  ;;  %v60_v20 = vld [vmem:[%s679_s1 + $0x180] sm:$0xff] }
  0x14   :  { %375 = vmatmul.mubr.msk.f32.vlgmr.msra.gmra.mrb[0].mxu0 %vm68_vm0, %v11_v58  ;;  %v453_v21 = vpack.c.bf16 %v65_v19, %v58_v18 }
  0x15   :  { %442 = vmatpush1.bf16.msra.mxu0 %v441_v59  ;;  %376 = vmatmul.mubr.msk.f32.vlgmr.msra.gmra.mrb[0].mxu1 %vm68_vm0, %v11_v58 }
  0x16   :  { %457 = vmatpush3.bf16.msra.mxu1 %v456_v60  ;;  %444 = vmatprep.subr.bf16.mxu0 %v443_v61 }
  0x17   :  { %458 = vmatprep.subr.bf16.mxu1 %v471_v1  ;;  %278 = vmatprep.mubr.f32.mxu0 %v470_v3 }
  0x18   :  { %404 = vmatprep.mubr.msk.f32.mxu1 %vm472_vm1, %v470_v3  ;;  %v67_v3 = vld [vmem:[%s679_s1 + $0x1b8] sm:$0xff] }
  0x19   :  { %446 = vmatpush1.bf16.msra.mxu0 %v445_v6  ;;  %v465_v22 = vpack.c.bf16 %v67_v3, %v60_v20 }
  0x1a   :  { %460 = vmatpush3.bf16.msra.mxu1 %v459_v7  ;;  %448 = vmatprep.subr.bf16.mxu0 %v447_v8 }
  0x1b   :  { %461 = vmatprep.subr.bf16.mxu1 %v471_v1 }
  0x1d   :  { %450 = vmatpush1.bf16.msra.mxu0 %v449_v15 }
  0x1e   :  { %463 = vmatpush3.bf16.msra.mxu1 %v462_v16  ;;  %452 = vmatprep.subr.bf16.mxu0 %v451_v17 }
  0x1f   :  { %464 = vmatprep.subr.bf16.mxu1 %v471_v1 }
  0x21   :  { %454 = vmatpush1.bf16.msra.mxu0 %v453_v21 }
  0x22   :  { %466 = vmatpush3.bf16.msra.mxu1 %v465_v22 }
  0x24   :  { %377 = vmatmul.mubr.msk.f32.vlgmr.msra.gmra.mrb[2].mxu0 %vm68_vm0, %v11_v58 }
  0x25   :  { %405 = vmatmul.mubr.msk.f32.vlgmr.msra.gmra.mrb[2].mxu1 %vm68_vm0, %v11_v58 }
  0xe7   :  { %v138_v23 = vpop.f32.mrb[0].mxu0 }
  0xe8   :  { %v140_v24 = vpop.f32.mrb[1].mxu0  ;;  %v209_v25 = vpop.f32.mrb[0].mxu1 }
  0xe9   :  { %v361_v26 = vcombine.low %v138_v23, %v140_v24  ;;  %v211_v27 = vpop.f32.mrb[1].mxu1 }
  0xea   :  { %v362_v28 = vcombine.low %v209_v25, %v211_v27 }
  0xeb   :  { %367 = vst [vmem:[%s681_s2] sm:$0xff] %v361_v26 }
  0xec   :  { %368 = vst [vmem:[%s681_s2 + $0x8] sm:$0xff] %v362_v28 }
  0xf7   :  { %v280_v29 = vpop.f32.mrb[2].mxu0 }
  0xf8   :  { %v282_v30 = vpop.f32.mrb[3].mxu0  ;;  %v351_v31 = vpop.f32.mrb[2].mxu1 }
  0xf9   :  { %v363_v32 = vcombine.low %v280_v29, %v282_v30  ;;  %370 = vst [vmem:[%s681_s2 + $0x18] sm:$0xf] %v351_v31  ;;  %v406_v33 = vpop.f32.mrb[3].mxu1 }
  0xfb   :  { %369 = vst [vmem:[%s681_s2 + $0x10] sm:$0xff] %v363_v32 }

// kernel: dgdn_forward.9
= control target key start
LH: loop header
LB: loop body
LE: loop exit
PB: predicated region body
PF: predicated region fallthrough
CT: control target
= control target key end

     0   :  { %vm33_vm0 = vcmask 1040384   ;;  %vm588_vm1 = vmmov 1   ;;  %v589_v3 = vmov 0.0   ;;  %vm26_vm3 = vcmask 72704   ;;  %s744_s0 = inlined_call_operand.vmem [shape: f32[9,512], index: 0, kind: input, shape index: {}]   ;;  %s745_s1 = inlined_call_operand.vmem [shape: f32[9,9], index: 1, kind: input, shape index: {}]   ;;  %s746_s2 = inlined_call_operand.vmem [shape: f32[9,9], index: 2, kind: input, shape index: {}]   ;;  %s747_s3 = inlined_call_operand.vmem [shape: f32[9,512], index: 3, kind: output, shape index: {0}]   ;;  %s748_s4 = inlined_call_operand.vmem [shape: f32[9,512], index: 4, kind: output, shape index: {1}]  }
   0x1   :  { %v19_v0 = vld [vmem:[%s744_s0 + $0x8] sm:$0xff]  ;;  %vm622_vm2 = vmpackc.low %vm33_vm0, %vm588_vm1  ;;  %110 = vmatprep.mubr.f32.mxu0 %v589_v3  ;;  %187 = vmatprep.mubr.f32.mxu1 %v589_v3  ;;  %v21_v5 = vld [vmem:[%s744_s0 + $0x18] sm:$0xff] }
   0x2   :  { %v23_v1 = vld [vmem:[%s744_s0 + $0x28] sm:$0x1]  ;;  %v25_v6 = vld [vmem:[%s744_s0 + $0x38] sm:$0x1]  ;;  %v18_v7 = vld [vmem:[%s744_s0] sm:$0xff] }
   0x3   :  { %v522_v4 = vpack.c.bf16 %v23_v1, %v19_v0  ;;  %v528_v8 = vpack.c.bf16 %v25_v6, %v21_v5  ;;  %v22_v9 = vld [vmem:[%s744_s0 + $0x20] sm:$0x1]  ;;  %v20_v10 = vld [vmem:[%s744_s0 + $0x10] sm:$0xff]  ;;  %v17_v15 = vld [vmem:[%s745_s1 + $0x8] sm:$0x1] }
   0x4   :  { %v24_v11 = vld [vmem:[%s744_s0 + $0x30] sm:$0x1]  ;;  %v525_v12 = vpack.c.bf16 %v22_v9, %v18_v7  ;;  %v16_v14 = vld [vmem:[%s745_s1] sm:$0xff]  ;;  %v209_v37 = vld [vmem:[%s746_s2 + $0x8] sm:$0x1] }
   0x5   :  { %524 = vmatprep.subr.msk.bf16.mxu0 %vm622_vm2, %v522_v4  ;;  %v531_v13 = vpack.c.bf16 %v24_v11, %v20_v10  ;;  %530 = vmatprep.subr.msk.bf16.mxu1 %vm622_vm2, %v528_v8  ;;  %v208_v36 = vld [vmem:[%s746_s2] sm:$0xff] }
   0x6   :  { %527 = vmatpush1.bf16.msk.msra.mxu0 %vm622_vm2, %v525_v12 }
   0x7   :  { %533 = vmatpush1.bf16.msk.msra.mxu1 %vm622_vm2, %v531_v13 }
   0x9   :  { %508 = vmatmul.mubr.msk.f32.vlgmr.msra.gmra.mrb[0].mxu0 %vm26_vm3, %v16_v14 }
   0xa   :  { %512 = vmatmul.mubr.msk.f32.vlgmr.msra.gmra.mrb[0].mxu1 %vm26_vm3, %v16_v14  ;;  %116 = vmatprep.mubr.f32.mxu0 %v589_v3 }
   0xb   :  { %193 = vmatprep.mubr.f32.mxu1 %v589_v3 }
   0xd   :  { %509 = vmatmul.mubr.msk.f32.gmra.mrb[2].mxu0 %vm26_vm3, %v17_v15 }
   0xe   :  { %513 = vmatmul.mubr.msk.f32.gmra.mrb[2].mxu1 %vm26_vm3, %v17_v15  ;;  %292 = vmatprep.mubr.f32.mxu0 %v589_v3 }
   0xf   :  { %369 = vmatprep.mubr.f32.mxu1 %v589_v3 }
  0xdc   :  { %v112_v16 = vpop.f32.mrb[0].mxu0 }
  0xdd   :  { %v189_v17 = vpop.f32.mrb[0].mxu1  ;;  %548 = vtanh.f32 %v112_v16  ;;  %v114_v18 = vpop.f32.mrb[1].mxu0 }
  0xde   :  { %v191_v19 = vpop.f32.mrb[1].mxu1  ;;  %550 = vtanh.f32 %v189_v17 }
  0xdf   :  { %552 = vtanh.f32 %v114_v18 }
  0xe0   :  { %554 = vtanh.f32 %v191_v19  ;;  %v118_v20 = vpop.f32.mrb[2].mxu0 }
  0xe1   :  { %v195_v21 = vpop.f32.mrb[2].mxu1  ;;  %556 = vtanh.f32 %v118_v20  ;;  %v120_v22 = vpop.f32.mrb[3].mxu0 }
  0xe2   :  { %v197_v23 = vpop.f32.mrb[3].mxu1  ;;  %558 = vtanh.f32 %v195_v21 }
  0xe3   :  { %560 = vtanh.f32 %v120_v22 }
  0xe4   :  { %562 = vtanh.f32 %v197_v23 }
  0xe7   :  { %v549_v24 = vpop.eup %548 }
  0xe8   :  { %v551_v25 = vpop.eup %550 }
  0xe9   :  { %v553_v26 = vpop.eup %552 }
  0xea   :  { %v555_v27 = vpop.eup %554 }
  0xeb   :  { %v557_v28 = vpop.eup %556 }
  0xec   :  { %v559_v29 = vpop.eup %558  ;;  %v537_v30 = vpack.c.bf16 %v557_v28, %v549_v24 }
  0xed   :  { %v561_v31 = vpop.eup %560  ;;  %v543_v32 = vpack.c.bf16 %v559_v29, %v551_v25 }
  0xee   :  { %v563_v33 = vpop.eup %562  ;;  %v534_v34 = vpack.c.bf16 %v561_v31, %v553_v26 }
  0xef   :  { %v540_v35 = vpack.c.bf16 %v563_v33, %v555_v27 }
  0xf0   :  { %536 = vmatprep.subr.msk.bf16.mxu0 %vm622_vm2, %v534_v34 }
  0xf1   :  { %542 = vmatprep.subr.msk.bf16.mxu1 %vm622_vm2, %v540_v35  ;;  %539 = vmatpush1.bf16.msk.msra.mxu0 %vm622_vm2, %v537_v30 }
  0xf2   :  { %545 = vmatpush1.bf16.msk.msra.mxu1 %vm622_vm2, %v543_v32 }
  0xf4   :  { %516 = vmatmul.mubr.msk.f32.vlgmr.msra.gmra.mrb[4].mxu0 %vm26_vm3, %v208_v36 }
  0xf5   :  { %520 = vmatmul.mubr.msk.f32.vlgmr.msra.gmra.mrb[4].mxu1 %vm26_vm3, %v208_v36  ;;  %298 = vmatprep.mubr.f32.mxu0 %v589_v3 }
  0xf6   :  { %375 = vmatprep.mubr.f32.mxu1 %v589_v3 }
  0xf8   :  { %517 = vmatmul.mubr.msk.f32.gmra.mrb[6].mxu0 %vm26_vm3, %v209_v37 }
  0xf9   :  { %521 = vmatmul.mubr.msk.f32.gmra.mrb[6].mxu1 %vm26_vm3, %v209_v37 }
 0x1c7   :  { %v294_v38 = vpop.f32.mrb[4].mxu0 }
 0x1c8   :  { %382 = vst [vmem:[%s747_s3] sm:$0xff] %v294_v38  ;;  %v371_v39 = vpop.f32.mrb[4].mxu1  ;;  %v296_v40 = vpop.f32.mrb[5].mxu0 }
 0x1c9   :  { %384 = vst [vmem:[%s747_s3 + $0x10] sm:$0xff] %v371_v39  ;;  %383 = vst [vmem:[%s747_s3 + $0x8] sm:$0xff] %v296_v40  ;;  %v373_v41 = vpop.f32.mrb[5].mxu1 }
 0x1ca   :  { %385 = vst [vmem:[%s747_s3 + $0x18] sm:$0xff] %v373_v41 }
 0x1cb   :  { %v300_v42 = vpop.f32.mrb[6].mxu0 }
 0x1cc   :  { %386 = vst [vmem:[%s747_s3 + $0x20] sm:$0x1] %v300_v42  ;;  %v390_v43 = vsel %vm33_vm0, %v300_v42, -inf  ;;  %v377_v44 = vpop.f32.mrb[6].mxu1  ;;  %v302_v45 = vpop.f32.mrb[7].mxu0 }
 0x1cd   :  { %v391_v46 = vmax.f32 %v294_v38, %v390_v43  ;;  %388 = vst [vmem:[%s747_s3 + $0x30] sm:$0x1] %v377_v44  ;;  %v406_v47 = vsel %vm33_vm0, %v377_v44, -inf  ;;  %387 = vst [vmem:[%s747_s3 + $0x28] sm:$0x1] %v302_v45  ;;  %v398_v48 = vsel %vm33_vm0, %v302_v45, -inf }
 0x1ce   :  { %v379_v49 = vpop.f32.mrb[7].mxu1  ;;  %v407_v50 = vmax.f32 %v371_v39, %v406_v47  ;;  %v399_v51 = vmax.f32 %v296_v40, %v398_v48 }
 0x1cf   :  { %389 = vst [vmem:[%s747_s3 + $0x38] sm:$0x1] %v379_v49  ;;  %v414_v52 = vsel %vm33_vm0, %v379_v49, -inf  ;;  %v392_v53 = vrot.slane %v391_v46, 4 }
 0x1d0   :  { %v415_v54 = vmax.f32 %v373_v41, %v414_v52  ;;  %v408_v55 = vrot.slane %v407_v50, 4  ;;  %v400_v56 = vrot.slane %v399_v51, 4 }
 0x1d1   :  { %v393_v57 = vmax.f32 %v391_v46, %v392_v53 }
 0x1d2   :  { %v416_v58 = vrot.slane %v415_v54, 4  ;;  %v409_v59 = vmax.f32 %v407_v50, %v408_v55  ;;  %v401_v60 = vmax.f32 %v399_v51, %v400_v56 }
 0x1d3   :  { %v394_v61 = vrot.slane %v393_v57, 2 }
 0x1d4   :  { %v417_v62 = vmax.f32 %v415_v54, %v416_v58  ;;  %v410_v63 = vrot.slane %v409_v59, 2  ;;  %v402_v0 = vrot.slane %v401_v60, 2 }
 0x1d5   :  { %v395_v1 = vmax.f32 %v393_v57, %v394_v61 }
 0x1d6   :  { %v418_v2 = vrot.slane %v417_v62, 2  ;;  %v411_v3 = vmax.f32 %v409_v59, %v410_v63  ;;  %v403_v4 = vmax.f32 %v401_v60, %v402_v0 }
 0x1d7   :  { %v396_v5 = vrot.slane %v395_v1, 1 }
 0x1d8   :  { %v419_v6 = vmax.f32 %v417_v62, %v418_v2  ;;  %v412_v7 = vrot.slane %v411_v3, 1  ;;  %v404_v8 = vrot.slane %v403_v4, 1 }
 0x1d9   :  { %v397_v9 = vmax.f32 %v395_v1, %v396_v5 }
 0x1da   :  { %v420_v10 = vrot.slane %v419_v6, 1  ;;  %v413_v11 = vmax.f32 %v411_v3, %v412_v7  ;;  %v405_v12 = vmax.f32 %v403_v4, %v404_v8 }
 0x1db   :  { %v422_v13 = vsub.f32 %v294_v38, %v397_v9  ;;  %v426_v14 = vsub.f32 %v300_v42, %v397_v9 }
 0x1dc   :  { %v421_v15 = vmax.f32 %v419_v6, %v420_v10  ;;  %v424_v16 = vsub.f32 %v371_v39, %v413_v11  ;;  %v428_v17 = vsub.f32 %v377_v44, %v413_v11  ;;  %v423_v18 = vsub.f32 %v296_v40, %v405_v12 }
 0x1dd   :  { %v427_v19 = vsub.f32 %v302_v45, %v405_v12  ;;  %v430_v20 = vmul.f32 1.442695, %v422_v13  ;;  %v438_v21 = vmul.f32 1.442695, %v426_v14 }
 0x1de   :  { %v425_v22 = vsub.f32 %v373_v41, %v421_v15  ;;  %v429_v23 = vsub.f32 %v379_v49, %v421_v15  ;;  %v434_v24 = vmul.f32 1.442695, %v424_v16  ;;  %v442_v25 = vmul.f32 1.442695, %v428_v17 }
 0x1df   :  { %564 = vpow2.f32 %v430_v20  ;;  %v432_v26 = vmul.f32 1.442695, %v423_v18  ;;  %v440_v27 = vmul.f32 1.442695, %v427_v19 }
 0x1e0   :  { %566 = vpow2.f32 %v438_v21  ;;  %v436_v28 = vmul.f32 1.442695, %v425_v22  ;;  %v444_v29 = vmul.f32 1.442695, %v429_v23 }
 0x1e1   :  { %568 = vpow2.f32 %v434_v24 }
 0x1e2   :  { %570 = vpow2.f32 %v442_v25 }
 0x1e3   :  { %572 = vpow2.f32 %v432_v26 }
 0x1e4   :  { %574 = vpow2.f32 %v440_v27 }
 0x1e5   :  { %576 = vpow2.f32 %v436_v28 }
 0x1e6   :  { %578 = vpow2.f32 %v444_v29 }
 0x1e9   :  { %v565_v30 = vpop.eup %564 }
 0x1ea   :  { %v567_v31 = vpop.eup %566 }
 0x1eb   :  { %v569_v32 = vpop.eup %568  ;;  %v446_v33 = vsel %vm33_vm0, %v567_v31, 0.0 }
 0x1ec   :  { %v571_v34 = vpop.eup %570  ;;  %v447_v35 = vadd.f32 %v565_v30, %v446_v33 }
 0x1ed   :  { %v573_v36 = vpop.eup %572  ;;  %v462_v37 = vsel %vm33_vm0, %v571_v34, 0.0 }
 0x1ee   :  { %v575_v38 = vpop.eup %574  ;;  %v448_v39 = vrot.slane %v447_v35, 4  ;;  %v463_v40 = vadd.f32 %v569_v32, %v462_v37 }
 0x1ef   :  { %v577_v41 = vpop.eup %576  ;;  %v454_v42 = vsel %vm33_vm0, %v575_v38, 0.0 }
 0x1f0   :  { %v579_v43 = vpop.eup %578  ;;  %v449_v44 = vadd.f32 %v448_v39, %v447_v35  ;;  %v464_v45 = vrot.slane %v463_v40, 4  ;;  %v455_v46 = vadd.f32 %v573_v36, %v454_v42 }
 0x1f1   :  { %v470_v47 = vsel %vm33_vm0, %v579_v43, 0.0 }
 0x1f2   :  { %v450_v48 = vrot.slane %v449_v44, 2  ;;  %v465_v49 = vadd.f32 %v464_v45, %v463_v40  ;;  %v456_v50 = vrot.slane %v455_v46, 4  ;;  %v471_v51 = vadd.f32 %v577_v41, %v470_v47 }
 0x1f4   :  { %v451_v52 = vadd.f32 %v450_v48, %v449_v44  ;;  %v466_v53 = vrot.slane %v465_v49, 2  ;;  %v457_v54 = vadd.f32 %v456_v50, %v455_v46  ;;  %v472_v55 = vrot.slane %v471_v51, 4 }
 0x1f6   :  { %v452_v56 = vrot.slane %v451_v52, 1  ;;  %v467_v57 = vadd.f32 %v466_v53, %v465_v49  ;;  %v458_v58 = vrot.slane %v457_v54, 2  ;;  %v473_v59 = vadd.f32 %v472_v55, %v471_v51 }
 0x1f8   :  { %v453_v60 = vadd.f32 %v452_v56, %v451_v52  ;;  %v468_v61 = vrot.slane %v467_v57, 1  ;;  %v459_v62 = vadd.f32 %v458_v58, %v457_v54  ;;  %v474_v63 = vrot.slane %v473_v59, 2 }
 0x1fa   :  { %580 = vrcp.f32 %v453_v60  ;;  %v469_v0 = vadd.f32 %v468_v61, %v467_v57  ;;  %v460_v1 = vrot.slane %v459_v62, 1  ;;  %v475_v2 = vadd.f32 %v474_v63, %v473_v59 }
 0x1fc   :  { %582 = vrcp.f32 %v469_v0  ;;  %v461_v3 = vadd.f32 %v460_v1, %v459_v62  ;;  %v476_v4 = vrot.slane %v475_v2, 1 }
 0x1fe   :  { %584 = vrcp.f32 %v461_v3  ;;  %v477_v5 = vadd.f32 %v476_v4, %v475_v2 }
 0x200   :  { %586 = vrcp.f32 %v477_v5 }
 0x204   :  { %v581_v6 = vpop.eup %580 }
 0x205   :  { %v479_v7 = vmul.f32 %v581_v6, %v565_v30  ;;  %v486_v8 = vmul.f32 %v581_v6, %v567_v31 }
 0x206   :  { %v583_v9 = vpop.eup %582 }
 0x207   :  { %490 = vst [vmem:[%s748_s4] sm:$0xff] %v479_v7  ;;  %494 = vst [vmem:[%s748_s4 + $0x20] sm:$0x1] %v486_v8  ;;  %v483_v10 = vmul.f32 %v583_v9, %v569_v32  ;;  %v488_v11 = vmul.f32 %v583_v9, %v571_v34 }
 0x208   :  { %v585_v12 = vpop.eup %584 }
 0x209   :  { %492 = vst [vmem:[%s748_s4 + $0x10] sm:$0xff] %v483_v10  ;;  %496 = vst [vmem:[%s748_s4 + $0x30] sm:$0x1] %v488_v11  ;;  %v481_v13 = vmul.f32 %v585_v12, %v573_v36  ;;  %v487_v14 = vmul.f32 %v585_v12, %v575_v38 }
 0x20a   :  { %v587_v15 = vpop.eup %586 }
 0x20b   :  { %491 = vst [vmem:[%s748_s4 + $0x8] sm:$0xff] %v481_v13  ;;  %495 = vst [vmem:[%s748_s4 + $0x28] sm:$0x1] %v487_v14  ;;  %v485_v16 = vmul.f32 %v587_v15, %v577_v41  ;;  %v489_v17 = vmul.f32 %v587_v15, %v579_v43 }
 0x20d   :  { %493 = vst [vmem:[%s748_s4 + $0x18] sm:$0xff] %v485_v16  ;;  %497 = vst [vmem:[%s748_s4 + $0x38] sm:$0x1] %v489_v17 }

// kernel: dgdn_forward.10
= control target key start
LH: loop header
LB: loop body
LE: loop exit
PB: predicated region body
PF: predicated region fallthrough
CT: control target
= control target key end

     0   :  { %v143_v0 = vmov 0.0|0.0   ;;  %vm144_vm0 = vmmov 0   ;;  %v145_v4 = vmov 0.0   ;;  %vm20_vm1 = vcmask 523264   ;;  %s191_s1 = inlined_call_operand.vmem [shape: f32[64,128], index: 1, kind: input, shape index: {}]   ;;  %s192_s0 = inlined_call_operand.vmem [shape: f32[8,64], index: 0, kind: input, shape index: {}]   ;;  %s193_s2 = inlined_call_operand.vmem [shape: f32[8,128], index: 2, kind: output, shape index: {}]  }
   0x1   :  { %128 = vmatprep.subr.bf16.mxu0 %v143_v0  ;;  %v12_v1 = vld [vmem:[%s191_s1] sm:$0xff]  ;;  %v13_v2 = vld [vmem:[%s191_s1 + $0x8] sm:$0xff]  ;;  %v14_v3 = vld [vmem:[%s191_s1 + $0x10] sm:$0xff]  ;;  %125 = vmatprep.mubr.msk.f32.mxu0 %vm144_vm0, %v145_v4 }
   0x2   :  { %v129_v5 = vpack.c.bf16 %v13_v2, %v12_v1  ;;  %v15_v6 = vld [vmem:[%s191_s1 + $0x18] sm:$0xff]  ;;  %v16_v8 = vld [vmem:[%s191_s1 + $0x20] sm:$0xff]  ;;  %v17_v9 = vld [vmem:[%s191_s1 + $0x28] sm:$0xff] }
   0x3   :  { %v132_v7 = vpack.c.bf16 %v15_v6, %v14_v3  ;;  %v135_v10 = vpack.c.bf16 %v17_v9, %v16_v8  ;;  %v18_v11 = vld [vmem:[%s191_s1 + $0x30] sm:$0xff]  ;;  %v19_v12 = vld [vmem:[%s191_s1 + $0x38] sm:$0xff]  ;;  %v11_v14 = vld [vmem:[%s192_s0] sm:$0xff] }
   0x4   :  { %130 = vmatpush3.bf16.msra.mxu0 %v129_v5  ;;  %v138_v13 = vpack.c.bf16 %v19_v12, %v18_v11 }
   0x5   :  { %131 = vmatprep.subr.bf16.mxu0 %v143_v0 }
   0x8   :  { %133 = vmatpush3.bf16.msra.mxu0 %v132_v7 }
   0x9   :  { %134 = vmatprep.subr.bf16.mxu0 %v143_v0 }
   0xc   :  { %136 = vmatpush3.bf16.msra.mxu0 %v135_v10 }
   0xd   :  { %137 = vmatprep.subr.bf16.mxu0 %v143_v0 }
  0x10   :  { %139 = vmatpush3.bf16.msra.mxu0 %v138_v13 }
  0x13   :  { %126 = vmatmul.mubr.msk.f32.vlgmr.msra.gmra.mrb[0].mxu0 %vm20_vm1, %v11_v14 }
  0xe6   :  { %v90_v15 = vpop.f32.mrb[0].mxu0 }
  0xe7   :  { %94 = vst [vmem:[%s193_s2] sm:$0xff] %v90_v15  ;;  %v127_v16 = vpop.f32.mrb[1].mxu0 }

// kernel: dgdn_forward.11
= control target key start
LH: loop header
LB: loop body
LE: loop exit
PB: predicated region body
PF: predicated region fallthrough
CT: control target
= control target key end

     0   :  { %v572_v0 = vmov 0.0|0.0   ;;  %vm573_vm0 = vmmov 0   ;;  %v574_v4 = vmov 0.0   ;;  %s828_s1 = inlined_call_operand.vmem [shape: f32[128,128], index: 1, kind: input, shape index: {}]   ;;  %s829_s3 = inlined_call_operand.vmem [shape: f32[128,128], index: 3, kind: input, shape index: {}]   ;;  %s830_s5 = inlined_call_operand.vmem [shape: f32[128,128], index: 5, kind: input, shape index: {}]   ;;  %s831_s0 = inlined_call_operand.vmem [shape: f32[2,128], index: 0, kind: input, shape index: {}]   ;;  %s832_s2 = inlined_call_operand.vmem [shape: f32[1,128], index: 2, kind: input, shape index: {}]   ;;  %s833_s4 = inlined_call_operand.vmem [shape: f32[1,128], index: 4, kind: input, shape index: {}]   ;;  %s834_s6 = inlined_call_operand.vmem [shape: f32[1,128], index: 6, kind: input, shape index: {}]   ;;  %s835_s8 = inlined_call_operand.vmem [shape: f32[2,128], index: 8, kind: output, shape index: {0}]   ;;  %s836_s9 = inlined_call_operand.vmem [shape: f32[2,128], index: 9, kind: output, shape index: {1}]   ;;  %s837_s7 = inlined_call_operand.vmem [shape: f32[2,128], index: 7, kind: input, shape index: {}]   ;;  %s838_s10 = inlined_call_operand.vmem [shape: f32[2,128], index: 10, kind: output, shape index: {2}]  }
   0x1   :  { %493 = vmatprep.subr.bf16.mxu0 %v572_v0  ;;  %v33_v1 = vld [vmem:[%s828_s1] sm:$0xff]  ;;  %v34_v2 = vld [vmem:[%s828_s1 + $0x8] sm:$0xff]  ;;  %v35_v3 = vld [vmem:[%s828_s1 + $0x10] sm:$0xff]  ;;  %420 = vmatprep.mubr.msk.f32.mxu0 %vm573_vm0, %v574_v4 }
   0x2   :  { %v494_v5 = vpack.c.bf16 %v34_v2, %v33_v1  ;;  %v36_v6 = vld [vmem:[%s828_s1 + $0x18] sm:$0xff]  ;;  %517 = vmatprep.subr.bf16.mxu1 %v572_v0  ;;  %455 = vmatprep.mubr.msk.f32.mxu1 %vm573_vm0, %v574_v4  ;;  %v37_v8 = vld [vmem:[%s828_s1 + $0x20] sm:$0xff]  ;;  %v38_v9 = vld [vmem:[%s828_s1 + $0x28] sm:$0xff] }
   0x3   :  { %v497_v7 = vpack.c.bf16 %v36_v6, %v35_v3  ;;  %v127_v10 = vld [vmem:[%s829_s3] sm:$0xff]  ;;  %v128_v11 = vld [vmem:[%s829_s3 + $0x8] sm:$0xff]  ;;  %v500_v12 = vpack.c.bf16 %v38_v9, %v37_v8  ;;  %v129_v14 = vld [vmem:[%s829_s3 + $0x10] sm:$0xff] }
   0x4   :  { %495 = vmatpush3.bf16.msra.mxu0 %v494_v5  ;;  %v518_v13 = vpack.c.bf16 %v128_v11, %v127_v10  ;;  %v130_v15 = vld [vmem:[%s829_s3 + $0x18] sm:$0xff]  ;;  %v39_v16 = vld [vmem:[%s828_s1 + $0x30] sm:$0xff]  ;;  %v131_v19 = vld [vmem:[%s829_s3 + $0x20] sm:$0xff] }
   0x5   :  { %496 = vmatprep.subr.bf16.mxu0 %v572_v0  ;;  %v40_v17 = vld [vmem:[%s828_s1 + $0x38] sm:$0xff]  ;;  %v521_v18 = vpack.c.bf16 %v130_v15, %v129_v14  ;;  %v132_v20 = vld [vmem:[%s829_s3 + $0x28] sm:$0xff]  ;;  %v41_v22 = vld [vmem:[%s828_s1 + $0x40] sm:$0xff] }
   0x6   :  { %519 = vmatpush3.bf16.msra.mxu1 %v518_v13  ;;  %v503_v21 = vpack.c.bf16 %v40_v17, %v39_v16  ;;  %v42_v23 = vld [vmem:[%s828_s1 + $0x48] sm:$0xff]  ;;  %v524_v24 = vpack.c.bf16 %v132_v20, %v131_v19  ;;  %v133_v25 = vld [vmem:[%s829_s3 + $0x30] sm:$0xff]  ;;  %v134_v26 = vld [vmem:[%s829_s3 + $0x38] sm:$0xff] }
   0x7   :  { %520 = vmatprep.subr.bf16.mxu1 %v572_v0  ;;  %v506_v27 = vpack.c.bf16 %v42_v23, %v41_v22  ;;  %v43_v28 = vld [vmem:[%s828_s1 + $0x50] sm:$0xff]  ;;  %v44_v29 = vld [vmem:[%s828_s1 + $0x58] sm:$0xff]  ;;  %v527_v30 = vpack.c.bf16 %v134_v26, %v133_v25  ;;  %v135_v31 = vld [vmem:[%s829_s3 + $0x40] sm:$0xff] }
   0x8   :  { %498 = vmatpush3.bf16.msra.mxu0 %v497_v7  ;;  %v136_v32 = vld [vmem:[%s829_s3 + $0x48] sm:$0xff]  ;;  %v509_v33 = vpack.c.bf16 %v44_v29, %v43_v28  ;;  %v45_v34 = vld [vmem:[%s828_s1 + $0x60] sm:$0xff]  ;;  %v47_v38 = vld [vmem:[%s828_s1 + $0x70] sm:$0xff] }
   0x9   :  { %499 = vmatprep.subr.bf16.mxu0 %v572_v0  ;;  %v46_v35 = vld [vmem:[%s828_s1 + $0x68] sm:$0xff]  ;;  %v530_v36 = vpack.c.bf16 %v136_v32, %v135_v31  ;;  %v48_v39 = vld [vmem:[%s828_s1 + $0x78] sm:$0xff]  ;;  %v220_v41 = vld [vmem:[%s830_s5] sm:$0xff] }
   0xa   :  { %522 = vmatpush3.bf16.msra.mxu1 %v521_v18  ;;  %v512_v37 = vpack.c.bf16 %v46_v35, %v45_v34  ;;  %v515_v40 = vpack.c.bf16 %v48_v39, %v47_v38  ;;  %v221_v42 = vld [vmem:[%s830_s5 + $0x8] sm:$0xff]  ;;  %v32_v43 = vld [vmem:[%s831_s0] sm:$0x3]  ;;  %v222_v45 = vld [vmem:[%s830_s5 + $0x10] sm:$0xff] }
   0xb   :  { %523 = vmatprep.subr.bf16.mxu1 %v572_v0  ;;  %v542_v44 = vpack.c.bf16 %v221_v42, %v220_v41  ;;  %v223_v46 = vld [vmem:[%s830_s5 + $0x18] sm:$0xff]  ;;  %v224_v48 = vld [vmem:[%s830_s5 + $0x20] sm:$0xff]  ;;  %v225_v49 = vld [vmem:[%s830_s5 + $0x28] sm:$0xff] }
   0xc   :  { %501 = vmatpush3.bf16.msra.mxu0 %v500_v12  ;;  %v545_v47 = vpack.c.bf16 %v223_v46, %v222_v45  ;;  %v548_v50 = vpack.c.bf16 %v225_v49, %v224_v48  ;;  %v226_v51 = vld [vmem:[%s830_s5 + $0x30] sm:$0xff]  ;;  %v227_v52 = vld [vmem:[%s830_s5 + $0x38] sm:$0xff]  ;;  %v228_v54 = vld [vmem:[%s830_s5 + $0x40] sm:$0xff] }
   0xd   :  { %502 = vmatprep.subr.bf16.mxu0 %v572_v0  ;;  %v551_v53 = vpack.c.bf16 %v227_v52, %v226_v51  ;;  %v229_v55 = vld [vmem:[%s830_s5 + $0x48] sm:$0xff]  ;;  %v137_v57 = vld [vmem:[%s829_s3 + $0x50] sm:$0xff]  ;;  %v138_v58 = vld [vmem:[%s829_s3 + $0x58] sm:$0xff] }
   0xe   :  { %525 = vmatpush3.bf16.msra.mxu1 %v524_v24  ;;  %v554_v56 = vpack.c.bf16 %v229_v55, %v228_v54  ;;  %v230_v59 = vld [vmem:[%s830_s5 + $0x50] sm:$0xff]  ;;  %v533_v60 = vpack.c.bf16 %v138_v58, %v137_v57  ;;  %v231_v61 = vld [vmem:[%s830_s5 + $0x58] sm:$0xff]  ;;  %v139_v63 = vld [vmem:[%s829_s3 + $0x60] sm:$0xff] }
   0xf   :  { %526 = vmatprep.subr.bf16.mxu1 %v572_v0  ;;  %v557_v62 = vpack.c.bf16 %v231_v61, %v230_v59  ;;  %v140_v1 = vld [vmem:[%s829_s3 + $0x68] sm:$0xff]  ;;  %v232_v2 = vld [vmem:[%s830_s5 + $0x60] sm:$0xff]  ;;  %v141_v5 = vld [vmem:[%s829_s3 + $0x70] sm:$0xff] }
  0x10   :  { %504 = vmatpush3.bf16.msra.mxu0 %v503_v21  ;;  %v536_v3 = vpack.c.bf16 %v140_v1, %v139_v63  ;;  %v142_v6 = vld [vmem:[%s829_s3 + $0x78] sm:$0xff]  ;;  %v234_v8 = vld [vmem:[%s830_s5 + $0x70] sm:$0xff]  ;;  %v334_v12 = vld [vmem:[%s832_s2] ss:$0 sm:$0xff] }
  0x11   :  { %505 = vmatprep.subr.bf16.mxu0 %v572_v0  ;;  %v235_v9 = vld [vmem:[%s830_s5 + $0x78] sm:$0xff]  ;;  %v539_v10 = vpack.c.bf16 %v142_v6, %v141_v5  ;;  %v335_v17 = vld [vmem:[%s833_s4] ss:$0 sm:$0xff] }
  0x12   :  { %528 = vmatpush3.bf16.msra.mxu1 %v527_v30  ;;  %v563_v11 = vpack.c.bf16 %v235_v9, %v234_v8  ;;  %v318_v26 = vld [vmem:[%s837_s7] sm:$0x3] }
  0x13   :  { %529 = vmatprep.subr.bf16.mxu1 %v572_v0 }
  0x14   :  { %507 = vmatpush3.bf16.msra.mxu0 %v506_v27 }
  0x15   :  { %508 = vmatprep.subr.bf16.mxu0 %v572_v0 }
  0x16   :  { %531 = vmatpush3.bf16.msra.mxu1 %v530_v36 }
  0x17   :  { %532 = vmatprep.subr.bf16.mxu1 %v572_v0 }
  0x18   :  { %510 = vmatpush3.bf16.msra.mxu0 %v509_v33 }
  0x19   :  { %511 = vmatprep.subr.bf16.mxu0 %v572_v0 }
  0x1a   :  { %534 = vmatpush3.bf16.msra.mxu1 %v533_v60 }
  0x1b   :  { %535 = vmatprep.subr.bf16.mxu1 %v572_v0 }
  0x1c   :  { %513 = vmatpush3.bf16.msra.mxu0 %v512_v37 }
  0x1d   :  { %514 = vmatprep.subr.bf16.mxu0 %v572_v0 }
  0x1e   :  { %537 = vmatpush3.bf16.msra.mxu1 %v536_v3 }
  0x1f   :  { %538 = vmatprep.subr.bf16.mxu1 %v572_v0 }
  0x20   :  { %516 = vmatpush3.bf16.msra.mxu0 %v515_v40 }
  0x21   :  { %541 = vmatprep.subr.bf16.mxu0 %v572_v0 }
  0x22   :  { %540 = vmatpush3.bf16.msra.mxu1 %v539_v10 }
  0x23   :  { %421 = vmatmul.mubr.f32.vlgmr.msra.gmra.mrb[0].mxu0 %v32_v43 }
  0x24   :  { %543 = vmatpush3.bf16.msra.mxu0 %v542_v44  ;;  %490 = vmatprep.mubr.msk.f32.mxu0 %vm573_vm0, %v574_v4  ;;  %v233_v4 = vld [vmem:[%s830_s5 + $0x68] sm:$0xff] }
  0x25   :  { %544 = vmatprep.subr.bf16.mxu0 %v572_v0  ;;  %v560_v7 = vpack.c.bf16 %v233_v4, %v232_v2 }
  0x28   :  { %546 = vmatpush3.bf16.msra.mxu0 %v545_v47 }
  0x29   :  { %547 = vmatprep.subr.bf16.mxu0 %v572_v0 }
  0x2c   :  { %549 = vmatpush3.bf16.msra.mxu0 %v548_v50 }
  0x2d   :  { %550 = vmatprep.subr.bf16.mxu0 %v572_v0 }
  0x30   :  { %552 = vmatpush3.bf16.msra.mxu0 %v551_v53 }
  0x31   :  { %553 = vmatprep.subr.bf16.mxu0 %v572_v0 }
  0x34   :  { %555 = vmatpush3.bf16.msra.mxu0 %v554_v56 }
  0x35   :  { %556 = vmatprep.subr.bf16.mxu0 %v572_v0 }
  0x38   :  { %558 = vmatpush3.bf16.msra.mxu0 %v557_v62 }
  0x39   :  { %559 = vmatprep.subr.bf16.mxu0 %v572_v0 }
  0x3c   :  { %561 = vmatpush3.bf16.msra.mxu0 %v560_v7 }
  0x3d   :  { %562 = vmatprep.subr.bf16.mxu0 %v572_v0  ;;  %v336_v0 = vld [vmem:[%s834_s6] ss:$0 sm:$0xff] }
  0x40   :  { %564 = vmatpush3.bf16.msra.mxu0 %v563_v11 }
  0xf6   :  { %v122_v13 = vpop.f32.mrb[0].mxu0 }
  0xf7   :  { %v123_v14 = vadd.f32 %v334_v12, %v122_v13  ;;  %v422_v15 = vpop.f32.mrb[1].mxu0 }
  0xf9   :  { %568 = vtanh.f32 %v123_v14 }
 0x103   :  { %v569_v16 = vpop.eup %568 }
 0x104   :  { %456 = vmatmul.mubr.f32.vlgmr.msra.gmra.mrb[0].mxu1 %v569_v16  ;;  %491 = vmatmul.mubr.f32.vlgmr.msra.gmra.mrb[2].mxu0 %v569_v16 }
 0x1d7   :  { %v216_v18 = vpop.f32.mrb[0].mxu1  ;;  %v309_v19 = vpop.f32.mrb[2].mxu0 }
 0x1d8   :  { %v217_v20 = vadd.f32 %v335_v17, %v216_v18  ;;  %v310_v21 = vadd.f32 %v336_v0, %v309_v19  ;;  %v457_v22 = vpop.f32.mrb[1].mxu1  ;;  %v492_v23 = vpop.f32.mrb[3].mxu0 }
 0x1da   :  { %313 = vst [vmem:[%s835_s8] sm:$0x3] %v217_v20  ;;  %314 = vst [vmem:[%s836_s9] sm:$0x3] %v310_v21  ;;  %v315_v24 = vmul.f32 0.5, %v310_v21 }
 0x1dc   :  { %v316_v25 = vmul.f32 1.442695, %v315_v24 }
 0x1de   :  { %570 = vpow2.f32 %v316_v25 }
 0x1e8   :  { %v571_v27 = vpop.eup %570 }
 0x1e9   :  { %v319_v28 = vmul.f32 %v571_v27, %v318_v26 }
 0x1eb   :  { %v320_v29 = vadd.f32 %v319_v28, %v217_v20 }
 0x1ed   :  { %321 = vst [vmem:[%s838_s10] sm:$0x3] %v320_v29 }

// kernel: dgdn_forward.12
= control target key start
LH: loop header
LB: loop body
LE: loop exit
PB: predicated region body
PF: predicated region fallthrough
CT: control target
= control target key end

     0   :  { %v182_v0 = vmov 0.0|0.0   ;;  %vm183_vm0 = vmmov 0   ;;  %v184_v4 = vmov 0.0   ;;  %s254_s1 = inlined_call_operand.vmem [shape: f32[128,128], index: 1, kind: input, shape index: {}]   ;;  %s255_s0 = inlined_call_operand.vmem [shape: f32[4,128], index: 0, kind: input, shape index: {}]   ;;  %s256_s2 = inlined_call_operand.vmem [shape: f32[4,128], index: 2, kind: output, shape index: {}]  }
   0x1   :  { %155 = vmatprep.subr.bf16.mxu0 %v182_v0  ;;  %v12_v1 = vld [vmem:[%s254_s1] sm:$0xff]  ;;  %v13_v2 = vld [vmem:[%s254_s1 + $0x8] sm:$0xff]  ;;  %v14_v3 = vld [vmem:[%s254_s1 + $0x10] sm:$0xff]  ;;  %152 = vmatprep.mubr.msk.f32.mxu0 %vm183_vm0, %v184_v4 }
   0x2   :  { %v156_v5 = vpack.c.bf16 %v13_v2, %v12_v1  ;;  %v15_v6 = vld [vmem:[%s254_s1 + $0x18] sm:$0xff]  ;;  %v16_v8 = vld [vmem:[%s254_s1 + $0x20] sm:$0xff]  ;;  %v17_v9 = vld [vmem:[%s254_s1 + $0x28] sm:$0xff] }
   0x3   :  { %v159_v7 = vpack.c.bf16 %v15_v6, %v14_v3  ;;  %v162_v10 = vpack.c.bf16 %v17_v9, %v16_v8  ;;  %v18_v11 = vld [vmem:[%s254_s1 + $0x30] sm:$0xff]  ;;  %v19_v12 = vld [vmem:[%s254_s1 + $0x38] sm:$0xff]  ;;  %v20_v14 = vld [vmem:[%s254_s1 + $0x40] sm:$0xff] }
   0x4   :  { %157 = vmatpush3.bf16.msra.mxu0 %v156_v5  ;;  %v165_v13 = vpack.c.bf16 %v19_v12, %v18_v11  ;;  %v21_v15 = vld [vmem:[%s254_s1 + $0x48] sm:$0xff]  ;;  %v22_v17 = vld [vmem:[%s254_s1 + $0x50] sm:$0xff]  ;;  %v23_v18 = vld [vmem:[%s254_s1 + $0x58] sm:$0xff] }
   0x5   :  { %158 = vmatprep.subr.bf16.mxu0 %v182_v0  ;;  %v168_v16 = vpack.c.bf16 %v21_v15, %v20_v14  ;;  %v171_v19 = vpack.c.bf16 %v23_v18, %v22_v17  ;;  %v24_v20 = vld [vmem:[%s254_s1 + $0x60] sm:$0xff]  ;;  %v25_v21 = vld [vmem:[%s254_s1 + $0x68] sm:$0xff]  ;;  %v26_v23 = vld [vmem:[%s254_s1 + $0x70] sm:$0xff] }
   0x6   :  { %v174_v22 = vpack.c.bf16 %v25_v21, %v24_v20  ;;  %v27_v24 = vld [vmem:[%s254_s1 + $0x78] sm:$0xff]  ;;  %v11_v26 = vld [vmem:[%s255_s0] sm:$0xf] }
   0x7   :  { %v177_v25 = vpack.c.bf16 %v27_v24, %v26_v23 }
   0x8   :  { %160 = vmatpush3.bf16.msra.mxu0 %v159_v7 }
   0x9   :  { %161 = vmatprep.subr.bf16.mxu0 %v182_v0 }
   0xc   :  { %163 = vmatpush3.bf16.msra.mxu0 %v162_v10 }
   0xd   :  { %164 = vmatprep.subr.bf16.mxu0 %v182_v0 }
  0x10   :  { %166 = vmatpush3.bf16.msra.mxu0 %v165_v13 }
  0x11   :  { %167 = vmatprep.subr.bf16.mxu0 %v182_v0 }
  0x14   :  { %169 = vmatpush3.bf16.msra.mxu0 %v168_v16 }
  0x15   :  { %170 = vmatprep.subr.bf16.mxu0 %v182_v0 }
  0x18   :  { %172 = vmatpush3.bf16.msra.mxu0 %v171_v19 }
  0x19   :  { %173 = vmatprep.subr.bf16.mxu0 %v182_v0 }
  0x1c   :  { %175 = vmatpush3.bf16.msra.mxu0 %v174_v22 }
  0x1d   :  { %176 = vmatprep.subr.bf16.mxu0 %v182_v0 }
  0x20   :  { %178 = vmatpush3.bf16.msra.mxu0 %v177_v25 }
  0x23   :  { %153 = vmatmul.mubr.f32.vlgmr.msra.gmra.mrb[0].mxu0 %v11_v26 }
  0xf6   :  { %v94_v27 = vpop.f32.mrb[0].mxu0 }
  0xf7   :  { %98 = vst [vmem:[%s256_s2] sm:$0xf] %v94_v27  ;;  %v154_v28 = vpop.f32.mrb[1].mxu0 }

// kernel: dgdn_forward.13
= control target key start
LH: loop header
LB: loop body
LE: loop exit
PB: predicated region body
PF: predicated region fallthrough
CT: control target
= control target key end

     0   :  { %s2802_s1 = inlined_call_operand.vmem [shape: f32[256,1664], index: 1, kind: input, shape index: {}]   ;;  %s2803_s0 = inlined_call_operand.vmem [shape: f32[1,256], index: 0, kind: input, shape index: {}]   ;;  %s2804_s2 = inlined_call_operand.vmem [shape: f32[1,1664], index: 2, kind: output, shape index: {}]  }
   0x1   :  { %v13_v0 = vld [vmem:[%s2802_s1 + $0x8] sm:$0xff]  ;;  %v26_v1 = vld [vmem:[%s2802_s1 + $0x70] sm:$0xff]  ;;  %v15_v2 = vld [vmem:[%s2802_s1 + $0x18] sm:$0xff] }
   0x2   :  { %v1083_v3 = vpack.c.bf16 %v26_v1, %v13_v0  ;;  %v28_v4 = vld [vmem:[%s2802_s1 + $0x80] sm:$0xff]  ;;  %v25_v6 = vld [vmem:[%s2802_s1 + $0x68] sm:$0xff]  ;;  %v14_v9 = vld [vmem:[%s2802_s1 + $0x10] sm:$0xff] }
   0x3   :  { %v12_v5 = vld [vmem:[%s2802_s1] sm:$0xff]  ;;  %v1147_v7 = vpack.c.bf16 %v28_v4, %v15_v2  ;;  %v27_v10 = vld [vmem:[%s2802_s1 + $0x78] sm:$0xff]  ;;  %v41_v14 = vld [vmem:[%s2802_s1 + $0xe8] sm:$0xff] }
   0x4   :  { %v1085_v8 = vpack.c.bf16 %v25_v6, %v12_v5  ;;  %v39_v11 = vld [vmem:[%s2802_s1 + $0xd8] sm:$0xff]  ;;  %1084 = vmatprep.subr.bf16.mxu0 %v1083_v3  ;;  %v1149_v12 = vpack.c.bf16 %v27_v10, %v14_v9  ;;  %v52_v13 = vld [vmem:[%s2802_s1 + $0x140] sm:$0xff]  ;;  %v54_v15 = vld [vmem:[%s2802_s1 + $0x150] sm:$0xff] }
   0x5   :  { %1148 = vmatprep.subr.bf16.mxu1 %v1147_v7  ;;  %v1087_v16 = vpack.c.bf16 %v52_v13, %v39_v11  ;;  %v1151_v17 = vpack.c.bf16 %v54_v15, %v41_v14  ;;  %v38_v18 = vld [vmem:[%s2802_s1 + $0xd0] sm:$0xff]  ;;  %v51_v19 = vld [vmem:[%s2802_s1 + $0x138] sm:$0xff]  ;;  %v40_v20 = vld [vmem:[%s2802_s1 + $0xe0] sm:$0xff] }
   0x6   :  { %1086 = vmatpush1.bf16.msra.mxu0 %v1085_v8  ;;  %1150 = vmatpush1.bf16.msra.mxu1 %v1149_v12  ;;  %v1089_v21 = vpack.c.bf16 %v51_v19, %v38_v18  ;;  %v53_v22 = vld [vmem:[%s2802_s1 + $0x148] sm:$0xff]  ;;  %v78_v24 = vld [vmem:[%s2802_s1 + $0x210] sm:$0xff]  ;;  %v67_v27 = vld [vmem:[%s2802_s1 + $0x1b8] sm:$0xff] }
   0x7   :  { %v65_v23 = vld [vmem:[%s2802_s1 + $0x1a8] sm:$0xff]  ;;  %1088 = vmatprep.subr.bf16.mxu0 %v1087_v16  ;;  %1152 = vmatprep.subr.bf16.mxu1 %v1151_v17  ;;  %v1153_v25 = vpack.c.bf16 %v53_v22, %v40_v20  ;;  %v80_v28 = vld [vmem:[%s2802_s1 + $0x220] sm:$0xff]  ;;  %v66_v32 = vld [vmem:[%s2802_s1 + $0x1b0] sm:$0xff] }
   0x8   :  { %v1091_v26 = vpack.c.bf16 %v78_v24, %v65_v23  ;;  %v64_v29 = vld [vmem:[%s2802_s1 + $0x1a0] sm:$0xff]  ;;  %v1155_v30 = vpack.c.bf16 %v80_v28, %v67_v27  ;;  %v77_v31 = vld [vmem:[%s2802_s1 + $0x208] sm:$0xff]  ;;  %v79_v33 = vld [vmem:[%s2802_s1 + $0x218] sm:$0xff] }
   0x9   :  { %v1093_v34 = vpack.c.bf16 %v77_v31, %v64_v29  ;;  %v91_v35 = vld [vmem:[%s2802_s1 + $0x278] sm:$0xff]  ;;  %v104_v36 = vld [vmem:[%s2802_s1 + $0x2e0] sm:$0xff]  ;;  %v93_v37 = vld [vmem:[%s2802_s1 + $0x288] sm:$0xff]  ;;  %v1157_v38 = vpack.c.bf16 %v79_v33, %v66_v32 }
   0xa   :  { %1090 = vmatpush1.bf16.msra.mxu0 %v1089_v21  ;;  %1154 = vmatpush1.bf16.msra.mxu1 %v1153_v25  ;;  %v1095_v39 = vpack.c.bf16 %v104_v36, %v91_v35  ;;  %v106_v40 = vld [vmem:[%s2802_s1 + $0x2f0] sm:$0xff]  ;;  %v103_v42 = vld [vmem:[%s2802_s1 + $0x2d8] sm:$0xff]  ;;  %v92_v44 = vld [vmem:[%s2802_s1 + $0x280] sm:$0xff] }
   0xb   :  { %1092 = vmatprep.subr.bf16.mxu0 %v1091_v26  ;;  %v90_v41 = vld [vmem:[%s2802_s1 + $0x270] sm:$0xff]  ;;  %1156 = vmatprep.subr.bf16.mxu1 %v1155_v30  ;;  %v1159_v43 = vpack.c.bf16 %v106_v40, %v93_v37  ;;  %v105_v45 = vld [vmem:[%s2802_s1 + $0x2e8] sm:$0xff]  ;;  %v119_v48 = vld [vmem:[%s2802_s1 + $0x358] sm:$0xff] }
   0xc   :  { %v117_v46 = vld [vmem:[%s2802_s1 + $0x348] sm:$0xff]  ;;  %v130_v47 = vld [vmem:[%s2802_s1 + $0x3b0] sm:$0xff]  ;;  %v132_v49 = vld [vmem:[%s2802_s1 + $0x3c0] sm:$0xff]  ;;  %v1097_v50 = vpack.c.bf16 %v103_v42, %v90_v41  ;;  %v1161_v51 = vpack.c.bf16 %v105_v45, %v92_v44 }
   0xd   :  { %v1099_v52 = vpack.c.bf16 %v130_v47, %v117_v46  ;;  %v116_v53 = vld [vmem:[%s2802_s1 + $0x340] sm:$0xff]  ;;  %v129_v54 = vld [vmem:[%s2802_s1 + $0x3a8] sm:$0xff]  ;;  %v118_v55 = vld [vmem:[%s2802_s1 + $0x350] sm:$0xff]  ;;  %v1163_v56 = vpack.c.bf16 %v132_v49, %v119_v48  ;;  %v429_v46 = vlaneseq }
   0xe   :  { %1094 = vmatpush1.bf16.msra.mxu0 %v1093_v34  ;;  %1158 = vmatpush1.bf16.msra.mxu1 %v1157_v38  ;;  %v131_v57 = vld [vmem:[%s2802_s1 + $0x3b8] sm:$0xff]  ;;  %v156_v59 = vld [vmem:[%s2802_s1 + $0x480] sm:$0xff]  ;;  %v145_v60 = vld [vmem:[%s2802_s1 + $0x428] sm:$0xff]  ;;  %v1101_v62 = vpack.c.bf16 %v129_v54, %v116_v53 }
   0xf   :  { %1096 = vmatprep.subr.bf16.mxu0 %v1095_v39  ;;  %1160 = vmatprep.subr.bf16.mxu1 %v1159_v43  ;;  %v143_v58 = vld [vmem:[%s2802_s1 + $0x418] sm:$0xff]  ;;  %v158_v61 = vld [vmem:[%s2802_s1 + $0x490] sm:$0xff]  ;;  %v1165_v63 = vpack.c.bf16 %v131_v57, %v118_v55  ;;  %v144_v3 = vld [vmem:[%s2802_s1 + $0x420] sm:$0xff]  ;;  %vm1041_vm0 = vcmp.lt.s32.totalorder %v429_v46, 640 }
  0x10   :  { %v1103_v0 = vpack.c.bf16 %v156_v59, %v143_v58  ;;  %v142_v1 = vld [vmem:[%s2802_s1 + $0x410] sm:$0xff]  ;;  %v155_v2 = vld [vmem:[%s2802_s1 + $0x478] sm:$0xff]  ;;  %v1167_v4 = vpack.c.bf16 %v158_v61, %v145_v60  ;;  %v157_v5 = vld [vmem:[%s2802_s1 + $0x488] sm:$0xff]  ;;  %v1769_v59 = vshrl.u32 %v429_v46, 7 }
  0x11   :  { %v169_v6 = vld [vmem:[%s2802_s1 + $0x4e8] sm:$0xff]  ;;  %v182_v7 = vld [vmem:[%s2802_s1 + $0x550] sm:$0xff]  ;;  %v171_v8 = vld [vmem:[%s2802_s1 + $0x4f8] sm:$0xff]  ;;  %v1105_v10 = vpack.c.bf16 %v155_v2, %v142_v1  ;;  %v1169_v11 = vpack.c.bf16 %v157_v5, %v144_v3 }
  0x12   :  { %1098 = vmatpush1.bf16.msra.mxu0 %v1097_v50  ;;  %1162 = vmatpush1.bf16.msra.mxu1 %v1161_v51  ;;  %v184_v9 = vld [vmem:[%s2802_s1 + $0x560] sm:$0xff]  ;;  %v1107_v12 = vpack.c.bf16 %v182_v7, %v169_v6  ;;  %v181_v14 = vld [vmem:[%s2802_s1 + $0x548] sm:$0xff]  ;;  %v170_v15 = vld [vmem:[%s2802_s1 + $0x4f0] sm:$0xff] }
  0x13   :  { %1100 = vmatprep.subr.bf16.mxu0 %v1099_v52  ;;  %1164 = vmatprep.subr.bf16.mxu1 %v1163_v56  ;;  %v168_v13 = vld [vmem:[%s2802_s1 + $0x4e0] sm:$0xff]  ;;  %v1171_v16 = vpack.c.bf16 %v184_v9, %v171_v8  ;;  %v183_v17 = vld [vmem:[%s2802_s1 + $0x558] sm:$0xff]  ;;  %v197_v20 = vld [vmem:[%s2802_s1 + $0x5c8] sm:$0xff]  ;;  %v435_v8 = vsub.s32 1, %v1769_v59 }
  0x14   :  { %v195_v18 = vld [vmem:[%s2802_s1 + $0x5b8] sm:$0xff]  ;;  %v208_v19 = vld [vmem:[%s2802_s1 + $0x620] sm:$0xff]  ;;  %v210_v21 = vld [vmem:[%s2802_s1 + $0x630] sm:$0xff]  ;;  %v1109_v22 = vpack.c.bf16 %v181_v14, %v168_v13  ;;  %v1173_v23 = vpack.c.bf16 %v183_v17, %v170_v15 }
  0x15   :  { %v1111_v24 = vpack.c.bf16 %v208_v19, %v195_v18  ;;  %v194_v25 = vld [vmem:[%s2802_s1 + $0x5b0] sm:$0xff]  ;;  %v207_v26 = vld [vmem:[%s2802_s1 + $0x618] sm:$0xff]  ;;  %v196_v27 = vld [vmem:[%s2802_s1 + $0x5c0] sm:$0xff]  ;;  %v1175_v28 = vpack.c.bf16 %v210_v21, %v197_v20 }
  0x16   :  { %1102 = vmatpush1.bf16.msra.mxu0 %v1101_v62  ;;  %1166 = vmatpush1.bf16.msra.mxu1 %v1165_v63  ;;  %v209_v29 = vld [vmem:[%s2802_s1 + $0x628] sm:$0xff]  ;;  %v234_v31 = vld [vmem:[%s2802_s1 + $0x6f0] sm:$0xff]  ;;  %v223_v32 = vld [vmem:[%s2802_s1 + $0x698] sm:$0xff]  ;;  %v1113_v34 = vpack.c.bf16 %v207_v26, %v194_v25 }
  0x17   :  { %1104 = vmatprep.subr.bf16.mxu0 %v1103_v0  ;;  %1168 = vmatprep.subr.bf16.mxu1 %v1167_v4  ;;  %v221_v30 = vld [vmem:[%s2802_s1 + $0x688] sm:$0xff]  ;;  %v236_v33 = vld [vmem:[%s2802_s1 + $0x700] sm:$0xff]  ;;  %v1177_v35 = vpack.c.bf16 %v209_v29, %v196_v27  ;;  %v222_v39 = vld [vmem:[%s2802_s1 + $0x690] sm:$0xff] }
  0x18   :  { %v1115_v36 = vpack.c.bf16 %v234_v31, %v221_v30  ;;  %v220_v37 = vld [vmem:[%s2802_s1 + $0x680] sm:$0xff]  ;;  %v233_v38 = vld [vmem:[%s2802_s1 + $0x6e8] sm:$0xff]  ;;  %v1179_v40 = vpack.c.bf16 %v236_v33, %v223_v32  ;;  %v235_v41 = vld [vmem:[%s2802_s1 + $0x6f8] sm:$0xff] }
  0x19   :  { %v247_v42 = vld [vmem:[%s2802_s1 + $0x758] sm:$0xff]  ;;  %v260_v43 = vld [vmem:[%s2802_s1 + $0x7c0] sm:$0xff]  ;;  %v249_v44 = vld [vmem:[%s2802_s1 + $0x768] sm:$0xff]  ;;  %v1117_v47 = vpack.c.bf16 %v233_v38, %v220_v37  ;;  %v1181_v48 = vpack.c.bf16 %v235_v41, %v222_v39 }
  0x1a   :  { %1106 = vmatpush1.bf16.msra.mxu0 %v1105_v10  ;;  %1170 = vmatpush1.bf16.msra.mxu1 %v1169_v11  ;;  %v262_v45 = vld [vmem:[%s2802_s1 + $0x7d0] sm:$0xff]  ;;  %v1119_v49 = vpack.c.bf16 %v260_v43, %v247_v42  ;;  %v259_v51 = vld [vmem:[%s2802_s1 + $0x7b8] sm:$0xff]  ;;  %v248_v52 = vld [vmem:[%s2802_s1 + $0x760] sm:$0xff] }
  0x1b   :  { %1108 = vmatprep.subr.bf16.mxu0 %v1107_v12  ;;  %1172 = vmatprep.subr.bf16.mxu1 %v1171_v16  ;;  %v246_v50 = vld [vmem:[%s2802_s1 + $0x750] sm:$0xff]  ;;  %v1183_v53 = vpack.c.bf16 %v262_v45, %v249_v44  ;;  %v261_v54 = vld [vmem:[%s2802_s1 + $0x7c8] sm:$0xff]  ;;  %v275_v57 = vld [vmem:[%s2802_s1 + $0x838] sm:$0xff] }
  0x1c   :  { %v273_v55 = vld [vmem:[%s2802_s1 + $0x828] sm:$0xff]  ;;  %v286_v56 = vld [vmem:[%s2802_s1 + $0x890] sm:$0xff]  ;;  %v288_v58 = vld [vmem:[%s2802_s1 + $0x8a0] sm:$0xff]  ;;  %v1121_v60 = vpack.c.bf16 %v259_v51, %v246_v50  ;;  %v1185_v61 = vpack.c.bf16 %v261_v54, %v248_v52 }
  0x1d   :  { %v1123_v62 = vpack.c.bf16 %v286_v56, %v273_v55  ;;  %v272_v63 = vld [vmem:[%s2802_s1 + $0x820] sm:$0xff]  ;;  %v285_v0 = vld [vmem:[%s2802_s1 + $0x888] sm:$0xff]  ;;  %v274_v1 = vld [vmem:[%s2802_s1 + $0x830] sm:$0xff]  ;;  %v1187_v2 = vpack.c.bf16 %v288_v58, %v275_v57 }
  0x1e   :  { %1110 = vmatpush1.bf16.msra.mxu0 %v1109_v22  ;;  %1174 = vmatpush1.bf16.msra.mxu1 %v1173_v23  ;;  %v287_v3 = vld [vmem:[%s2802_s1 + $0x898] sm:$0xff]  ;;  %v312_v5 = vld [vmem:[%s2802_s1 + $0x960] sm:$0xff]  ;;  %v301_v6 = vld [vmem:[%s2802_s1 + $0x908] sm:$0xff]  ;;  %v1125_v9 = vpack.c.bf16 %v285_v0, %v272_v63 }
  0x1f   :  { %1112 = vmatprep.subr.bf16.mxu0 %v1111_v24  ;;  %1176 = vmatprep.subr.bf16.mxu1 %v1175_v28  ;;  %v299_v4 = vld [vmem:[%s2802_s1 + $0x8f8] sm:$0xff]  ;;  %v314_v7 = vld [vmem:[%s2802_s1 + $0x970] sm:$0xff]  ;;  %v1189_v11 = vpack.c.bf16 %v287_v3, %v274_v1  ;;  %v300_v14 = vld [vmem:[%s2802_s1 + $0x900] sm:$0xff] }
  0x20   :  { %v298_v10 = vld [vmem:[%s2802_s1 + $0x8f0] sm:$0xff]  ;;  %v1127_v12 = vpack.c.bf16 %v312_v5, %v299_v4  ;;  %v311_v13 = vld [vmem:[%s2802_s1 + $0x958] sm:$0xff]  ;;  %v313_v15 = vld [vmem:[%s2802_s1 + $0x968] sm:$0xff]  ;;  %v1191_v16 = vpack.c.bf16 %v314_v7, %v301_v6  ;;  %v431_v7 = vsub.s32 0, %v1769_v59 }
  0x21   :  { %v325_v17 = vld [vmem:[%s2802_s1 + $0x9c8] sm:$0xff]  ;;  %v338_v18 = vld [vmem:[%s2802_s1 + $0xa30] sm:$0xff]  ;;  %v1817_v19 = vld [vmem:[%s2803_s0] sm:$0x3]  ;;  %v1129_v23 = vpack.c.bf16 %v311_v13, %v298_v10  ;;  %v1193_v24 = vpack.c.bf16 %v313_v15, %v300_v14 }
  0x22   :  { %1114 = vmatpush1.bf16.msra.mxu0 %v1113_v34  ;;  %1178 = vmatpush1.bf16.msra.mxu1 %v1177_v35  ;;  %v327_v20 = vld [vmem:[%s2802_s1 + $0x9d8] sm:$0xff]  ;;  %v340_v21 = vld [vmem:[%s2802_s1 + $0xa40] sm:$0xff]  ;;  %v1826_v22 = vrot.slane %v1817_v19, %v435_v8  ;;  %v1131_v25 = vpack.c.bf16 %v338_v18, %v325_v17  ;;  %v337_v27 = vld [vmem:[%s2802_s1 + $0xa28] sm:$0xff] }
  0x23   :  { %1116 = vmatprep.subr.bf16.mxu0 %v1115_v36  ;;  %1180 = vmatprep.subr.bf16.mxu1 %v1179_v40  ;;  %v324_v26 = vld [vmem:[%s2802_s1 + $0x9c0] sm:$0xff]  ;;  %v326_v28 = vld [vmem:[%s2802_s1 + $0x9d0] sm:$0xff]  ;;  %v1195_v29 = vpack.c.bf16 %v340_v21, %v327_v20  ;;  %v339_v30 = vld [vmem:[%s2802_s1 + $0xa38] sm:$0xff]  ;;  %v1946_v21 = vrot.slane %v1817_v19, %v431_v7 }
  0x24   :  { %v351_v31 = vld [vmem:[%s2802_s1 + $0xa98] sm:$0xff]  ;;  %v364_v32 = vld [vmem:[%s2802_s1 + $0xb00] sm:$0xff]  ;;  %503 = vmatprep.mubr.f32.mxu0 %v1826_v22  ;;  %v353_v33 = vld [vmem:[%s2802_s1 + $0xaa8] sm:$0xff]  ;;  %574 = vmatprep.mubr.f32.mxu1 %v1826_v22  ;;  %v1133_v35 = vpack.c.bf16 %v337_v27, %v324_v26  ;;  %v1197_v36 = vpack.c.bf16 %v339_v30, %v326_v28 }
  0x25   :  { %v366_v34 = vld [vmem:[%s2802_s1 + $0xb10] sm:$0xff]  ;;  %v1135_v37 = vpack.c.bf16 %v364_v32, %v351_v31  ;;  %v363_v39 = vld [vmem:[%s2802_s1 + $0xaf8] sm:$0xff]  ;;  %v352_v40 = vld [vmem:[%s2802_s1 + $0xaa0] sm:$0xff] }
  0x26   :  { %1118 = vmatpush1.bf16.msra.mxu0 %v1117_v47  ;;  %1182 = vmatpush1.bf16.msra.mxu1 %v1181_v48  ;;  %v350_v38 = vld [vmem:[%s2802_s1 + $0xa90] sm:$0xff]  ;;  %v1199_v41 = vpack.c.bf16 %v366_v34, %v353_v33  ;;  %v365_v42 = vld [vmem:[%s2802_s1 + $0xb08] sm:$0xff]  ;;  %v379_v45 = vld [vmem:[%s2802_s1 + $0xb78] sm:$0xff] }
  0x27   :  { %1120 = vmatprep.subr.bf16.mxu0 %v1119_v49  ;;  %1184 = vmatprep.subr.bf16.mxu1 %v1183_v53  ;;  %v377_v43 = vld [vmem:[%s2802_s1 + $0xb68] sm:$0xff]  ;;  %v390_v44 = vld [vmem:[%s2802_s1 + $0xbd0] sm:$0xff]  ;;  %v392_v47 = vld [vmem:[%s2802_s1 + $0xbe0] sm:$0xff]  ;;  %v1137_v48 = vpack.c.bf16 %v363_v39, %v350_v38  ;;  %v1201_v49 = vpack.c.bf16 %v365_v42, %v352_v40 }
  0x28   :  { %v1139_v50 = vpack.c.bf16 %v390_v44, %v377_v43  ;;  %v376_v51 = vld [vmem:[%s2802_s1 + $0xb60] sm:$0xff]  ;;  %v389_v52 = vld [vmem:[%s2802_s1 + $0xbc8] sm:$0xff]  ;;  %v378_v53 = vld [vmem:[%s2802_s1 + $0xb70] sm:$0xff]  ;;  %v1203_v54 = vpack.c.bf16 %v392_v47, %v379_v45 }
  0x29   :  { %v391_v55 = vld [vmem:[%s2802_s1 + $0xbd8] sm:$0xff]  ;;  %v416_v57 = vld [vmem:[%s2802_s1 + $0xca0] sm:$0xff]  ;;  %v405_v58 = vld [vmem:[%s2802_s1 + $0xc48] sm:$0xff] }
  0x2a   :  { %1122 = vmatpush1.bf16.msra.mxu0 %v1121_v60  ;;  %1186 = vmatpush1.bf16.msra.mxu1 %v1185_v61  ;;  %v403_v56 = vld [vmem:[%s2802_s1 + $0xc38] sm:$0xff]  ;;  %v418_v60 = vld [vmem:[%s2802_s1 + $0xcb0] sm:$0xff]  ;;  %v1141_v61 = vpack.c.bf16 %v389_v52, %v376_v51  ;;  %v417_v4 = vld [vmem:[%s2802_s1 + $0xca8] sm:$0xff] }
  0x2b   :  { %1124 = vmatprep.subr.bf16.mxu0 %v1123_v62  ;;  %1188 = vmatprep.subr.bf16.mxu1 %v1187_v2  ;;  %v1205_v62 = vpack.c.bf16 %v391_v55, %v378_v53  ;;  %v1143_v63 = vpack.c.bf16 %v416_v57, %v403_v56  ;;  %v402_v0 = vld [vmem:[%s2802_s1 + $0xc30] sm:$0xff]  ;;  %v415_v1 = vld [vmem:[%s2802_s1 + $0xc98] sm:$0xff]  ;;  %v404_v2 = vld [vmem:[%s2802_s1 + $0xc40] sm:$0xff]  ;;  %v1207_v3 = vpack.c.bf16 %v418_v60, %v405_v58 }
  0x2c   :  { %v17_v5 = vld [vmem:[%s2802_s1 + $0x28] sm:$0xff]  ;;  %v30_v6 = vld [vmem:[%s2802_s1 + $0x90] sm:$0xff]  ;;  %v19_v8 = vld [vmem:[%s2802_s1 + $0x38] sm:$0xff]  ;;  %v1145_v10 = vpack.c.bf16 %v415_v1, %v402_v0 }
  0x2d   :  { %v16_v13 = vld [vmem:[%s2802_s1 + $0x20] sm:$0xff]  ;;  %v29_v14 = vld [vmem:[%s2802_s1 + $0x88] sm:$0xff]  ;;  %v18_v15 = vld [vmem:[%s2802_s1 + $0x30] sm:$0xff] }
  0x2e   :  { %1126 = vmatpush1.bf16.msra.mxu0 %v1125_v9  ;;  %1190 = vmatpush1.bf16.msra.mxu1 %v1189_v11  ;;  %v32_v9 = vld [vmem:[%s2802_s1 + $0xa0] sm:$0xff]  ;;  %v1209_v11 = vpack.c.bf16 %v417_v4, %v404_v2  ;;  %v31_v17 = vld [vmem:[%s2802_s1 + $0x98] sm:$0xff]  ;;  %v42_v28 = vld [vmem:[%s2802_s1 + $0xf0] sm:$0xff] }
  0x2f   :  { %1128 = vmatprep.subr.bf16.mxu0 %v1127_v12  ;;  %1192 = vmatprep.subr.bf16.mxu1 %v1191_v16  ;;  %v1211_v12 = vpack.c.bf16 %v30_v6, %v17_v5  ;;  %v1275_v16 = vpack.c.bf16 %v32_v9, %v19_v8  ;;  %v43_v18 = vld [vmem:[%s2802_s1 + $0xf8] sm:$0xff]  ;;  %v56_v20 = vld [vmem:[%s2802_s1 + $0x160] sm:$0xff]  ;;  %v1277_v26 = vpack.c.bf16 %v31_v17, %v18_v15  ;;  %v57_v31 = vld [vmem:[%s2802_s1 + $0x168] sm:$0xff] }
  0x30   :  { %v1215_v27 = vpack.c.bf16 %v56_v20, %v43_v18  ;;  %v55_v19 = vld [vmem:[%s2802_s1 + $0x158] sm:$0xff]  ;;  %v69_v32 = vld [vmem:[%s2802_s1 + $0x1c8] sm:$0xff]  ;;  %v82_v33 = vld [vmem:[%s2802_s1 + $0x230] sm:$0xff] }
  0x31   :  { %v71_v34 = vld [vmem:[%s2802_s1 + $0x1d8] sm:$0xff]  ;;  %v1219_v38 = vpack.c.bf16 %v82_v33, %v69_v32  ;;  %v68_v39 = vld [vmem:[%s2802_s1 + $0x1c0] sm:$0xff]  ;;  %v81_v40 = vld [vmem:[%s2802_s1 + $0x228] sm:$0xff] }
  0x32   :  { %1130 = vmatpush1.bf16.msra.mxu0 %v1129_v23  ;;  %1194 = vmatpush1.bf16.msra.mxu1 %v1193_v24  ;;  %v45_v23 = vld [vmem:[%s2802_s1 + $0x108] sm:$0xff]  ;;  %v58_v24 = vld [vmem:[%s2802_s1 + $0x170] sm:$0xff]  ;;  %v83_v43 = vld [vmem:[%s2802_s1 + $0x238] sm:$0xff] }
  0x33   :  { %1132 = vmatprep.subr.bf16.mxu0 %v1131_v25  ;;  %1196 = vmatprep.subr.bf16.mxu1 %v1195_v29  ;;  %v1213_v25 = vpack.c.bf16 %v29_v14, %v16_v13  ;;  %v44_v29 = vld [vmem:[%s2802_s1 + $0x100] sm:$0xff]  ;;  %v1279_v30 = vpack.c.bf16 %v58_v24, %v45_v23  ;;  %v95_v44 = vld [vmem:[%s2802_s1 + $0x298] sm:$0xff]  ;;  %v97_v47 = vld [vmem:[%s2802_s1 + $0x2a8] sm:$0xff] }
  0x34   :  { %v108_v45 = vld [vmem:[%s2802_s1 + $0x300] sm:$0xff]  ;;  %v94_v52 = vld [vmem:[%s2802_s1 + $0x290] sm:$0xff]  ;;  %v107_v53 = vld [vmem:[%s2802_s1 + $0x2f8] sm:$0xff] }
  0x35   :  { %v1223_v51 = vpack.c.bf16 %v108_v45, %v95_v44  ;;  %v109_v56 = vld [vmem:[%s2802_s1 + $0x308] sm:$0xff]  ;;  %v134_v58 = vld [vmem:[%s2802_s1 + $0x3d0] sm:$0xff]  ;;  %v123_v60 = vld [vmem:[%s2802_s1 + $0x378] sm:$0xff] }
  0x36   :  { %1134 = vmatpush1.bf16.msra.mxu0 %v1133_v35  ;;  %1198 = vmatpush1.bf16.msra.mxu1 %v1197_v36  ;;  %v84_v35 = vld [vmem:[%s2802_s1 + $0x240] sm:$0xff]  ;;  %v1217_v36 = vpack.c.bf16 %v55_v19, %v42_v28  ;;  %v121_v57 = vld [vmem:[%s2802_s1 + $0x368] sm:$0xff]  ;;  %v135_v5 = vld [vmem:[%s2802_s1 + $0x3d8] sm:$0xff] }
  0x37   :  { %1136 = vmatprep.subr.bf16.mxu0 %v1135_v37  ;;  %1200 = vmatprep.subr.bf16.mxu1 %v1199_v41  ;;  %v1281_v37 = vpack.c.bf16 %v57_v31, %v44_v29  ;;  %v70_v41 = vld [vmem:[%s2802_s1 + $0x1d0] sm:$0xff]  ;;  %v1283_v42 = vpack.c.bf16 %v84_v35, %v71_v34  ;;  %v1227_v0 = vpack.c.bf16 %v134_v58, %v121_v57  ;;  %v120_v1 = vld [vmem:[%s2802_s1 + $0x360] sm:$0xff]  ;;  %v133_v2 = vld [vmem:[%s2802_s1 + $0x3c8] sm:$0xff] }
  0x38   :  { %v147_v6 = vld [vmem:[%s2802_s1 + $0x438] sm:$0xff]  ;;  %v160_v7 = vld [vmem:[%s2802_s1 + $0x4a0] sm:$0xff]  ;;  %v149_v8 = vld [vmem:[%s2802_s1 + $0x448] sm:$0xff] }
  0x39   :  { %v162_v9 = vld [vmem:[%s2802_s1 + $0x4b0] sm:$0xff]  ;;  %v159_v14 = vld [vmem:[%s2802_s1 + $0x498] sm:$0xff]  ;;  %v148_v15 = vld [vmem:[%s2802_s1 + $0x440] sm:$0xff] }
  0x3a   :  { %1138 = vmatpush1.bf16.msra.mxu0 %v1137_v48  ;;  %1202 = vmatpush1.bf16.msra.mxu1 %v1201_v49  ;;  %v110_v48 = vld [vmem:[%s2802_s1 + $0x310] sm:$0xff]  ;;  %v1221_v49 = vpack.c.bf16 %v81_v40, %v68_v39  ;;  %v161_v17 = vld [vmem:[%s2802_s1 + $0x4a8] sm:$0xff]  ;;  %v175_v23 = vld [vmem:[%s2802_s1 + $0x518] sm:$0xff] }
  0x3b   :  { %1140 = vmatprep.subr.bf16.mxu0 %v1139_v50  ;;  %1204 = vmatprep.subr.bf16.mxu1 %v1203_v54  ;;  %v1285_v50 = vpack.c.bf16 %v83_v43, %v70_v41  ;;  %v96_v54 = vld [vmem:[%s2802_s1 + $0x2a0] sm:$0xff]  ;;  %v1287_v55 = vpack.c.bf16 %v110_v48, %v97_v47  ;;  %v146_v13 = vld [vmem:[%s2802_s1 + $0x430] sm:$0xff]  ;;  %v173_v18 = vld [vmem:[%s2802_s1 + $0x508] sm:$0xff] }
  0x3c   :  { %v186_v20 = vld [vmem:[%s2802_s1 + $0x570] sm:$0xff]  ;;  %v188_v24 = vld [vmem:[%s2802_s1 + $0x580] sm:$0xff]  ;;  %v185_v19 = vld [vmem:[%s2802_s1 + $0x568] sm:$0xff] }
  0x3d   :  { %v172_v28 = vld [vmem:[%s2802_s1 + $0x500] sm:$0xff]  ;;  %v174_v29 = vld [vmem:[%s2802_s1 + $0x510] sm:$0xff]  ;;  %v187_v31 = vld [vmem:[%s2802_s1 + $0x578] sm:$0xff] }
  0x3e   :  { %1142 = vmatpush1.bf16.msra.mxu0 %v1141_v61  ;;  %1206 = vmatpush1.bf16.msra.mxu1 %v1205_v62  ;;  %v136_v61 = vld [vmem:[%s2802_s1 + $0x3e0] sm:$0xff]  ;;  %v1225_v62 = vpack.c.bf16 %v107_v53, %v94_v52  ;;  %v199_v32 = vld [vmem:[%s2802_s1 + $0x5d8] sm:$0xff]  ;;  %v201_v34 = vld [vmem:[%s2802_s1 + $0x5e8] sm:$0xff] }
  0x3f   :  { %1144 = vmatprep.subr.bf16.mxu0 %v1143_v63  ;;  %1208 = vmatprep.subr.bf16.mxu1 %v1207_v3  ;;  %v1289_v63 = vpack.c.bf16 %v109_v56, %v96_v54  ;;  %v122_v3 = vld [vmem:[%s2802_s1 + $0x370] sm:$0xff]  ;;  %v1291_v4 = vpack.c.bf16 %v136_v61, %v123_v60  ;;  %v212_v33 = vld [vmem:[%s2802_s1 + $0x640] sm:$0xff]  ;;  %v211_v40 = vld [vmem:[%s2802_s1 + $0x638] sm:$0xff] }
  0x40   :  { %v214_v35 = vld [vmem:[%s2802_s1 + $0x650] sm:$0xff]  ;;  %v200_v41 = vld [vmem:[%s2802_s1 + $0x5e0] sm:$0xff]  ;;  %v213_v43 = vld [vmem:[%s2802_s1 + $0x648] sm:$0xff] }
  0x41   :  { %v198_v39 = vld [vmem:[%s2802_s1 + $0x5d0] sm:$0xff]  ;;  %v225_v44 = vld [vmem:[%s2802_s1 + $0x6a8] sm:$0xff]  ;;  %v227_v47 = vld [vmem:[%s2802_s1 + $0x6b8] sm:$0xff] }
  0x42   :  { %1146 = vmatpush1.bf16.msra.mxu0 %v1145_v10  ;;  %1210 = vmatpush1.bf16.msra.mxu1 %v1209_v11  ;;  %v1229_v10 = vpack.c.bf16 %v133_v2, %v120_v1  ;;  %v1293_v11 = vpack.c.bf16 %v135_v5, %v122_v3  ;;  %v238_v45 = vld [vmem:[%s2802_s1 + $0x710] sm:$0xff]  ;;  %v240_v48 = vld [vmem:[%s2802_s1 + $0x720] sm:$0xff]  ;;  %v237_v53 = vld [vmem:[%s2802_s1 + $0x708] sm:$0xff] }
  0x43   :  { %1212 = vmatprep.subr.bf16.mxu0 %v1211_v12  ;;  %1276 = vmatprep.subr.bf16.mxu1 %v1275_v16  ;;  %v1231_v12 = vpack.c.bf16 %v160_v7, %v147_v6  ;;  %v1295_v16 = vpack.c.bf16 %v162_v9, %v149_v8  ;;  %v224_v52 = vld [vmem:[%s2802_s1 + $0x6a0] sm:$0xff]  ;;  %v226_v54 = vld [vmem:[%s2802_s1 + $0x6b0] sm:$0xff]  ;;  %v239_v56 = vld [vmem:[%s2802_s1 + $0x718] sm:$0xff] }
  0x44   :  { %v251_v57 = vld [vmem:[%s2802_s1 + $0x778] sm:$0xff]  ;;  %v264_v58 = vld [vmem:[%s2802_s1 + $0x7e0] sm:$0xff]  ;;  %v253_v60 = vld [vmem:[%s2802_s1 + $0x788] sm:$0xff] }
  0x45   :  { %504 = vmatmul.mubr.f32.vlgmr.msra.gmra.mrb[0].mxu0 %v1946_v21  ;;  %575 = vmatmul.mubr.f32.vlgmr.msra.gmra.mrb[0].mxu1 %v1946_v21  ;;  %v266_v61 = vld [vmem:[%s2802_s1 + $0x7f0] sm:$0xff]  ;;  %v263_v2 = vld [vmem:[%s2802_s1 + $0x7d8] sm:$0xff]  ;;  %v252_v3 = vld [vmem:[%s2802_s1 + $0x780] sm:$0xff] }
  0x46   :  { %1214 = vmatpush1.bf16.msra.mxu0 %v1213_v25  ;;  %1278 = vmatpush1.bf16.msra.mxu1 %v1277_v26  ;;  %v1233_v25 = vpack.c.bf16 %v159_v14, %v146_v13  ;;  %v1297_v26 = vpack.c.bf16 %v161_v17, %v148_v15  ;;  %v250_v1 = vld [vmem:[%s2802_s1 + $0x770] sm:$0xff]  ;;  %v265_v5 = vld [vmem:[%s2802_s1 + $0x7e8] sm:$0xff]  ;;  %v279_v8 = vld [vmem:[%s2802_s1 + $0x858] sm:$0xff] }
  0x47   :  { %1216 = vmatprep.subr.bf16.mxu0 %v1215_v27  ;;  %1280 = vmatprep.subr.bf16.mxu1 %v1279_v30  ;;  %v1235_v27 = vpack.c.bf16 %v186_v20, %v173_v18  ;;  %v1299_v30 = vpack.c.bf16 %v188_v24, %v175_v23  ;;  %v277_v6 = vld [vmem:[%s2802_s1 + $0x848] sm:$0xff]  ;;  %v290_v7 = vld [vmem:[%s2802_s1 + $0x8b0] sm:$0xff]  ;;  %v292_v9 = vld [vmem:[%s2802_s1 + $0x8c0] sm:$0xff] }
  0x48   :  { %645 = vmatprep.mubr.f32.mxu0 %v1826_v22  ;;  %716 = vmatprep.mubr.f32.mxu1 %v1826_v22  ;;  %v276_v13 = vld [vmem:[%s2802_s1 + $0x840] sm:$0xff]  ;;  %v289_v14 = vld [vmem:[%s2802_s1 + $0x8a8] sm:$0xff]  ;;  %v278_v15 = vld [vmem:[%s2802_s1 + $0x850] sm:$0xff] }
  0x49   :  { %v291_v17 = vld [vmem:[%s2802_s1 + $0x8b8] sm:$0xff]  ;;  %v316_v20 = vld [vmem:[%s2802_s1 + $0x980] sm:$0xff]  ;;  %v305_v23 = vld [vmem:[%s2802_s1 + $0x928] sm:$0xff] }
  0x4a   :  { %1218 = vmatpush1.bf16.msra.mxu0 %v1217_v36  ;;  %1282 = vmatpush1.bf16.msra.mxu1 %v1281_v37  ;;  %v1237_v36 = vpack.c.bf16 %v185_v19, %v172_v28  ;;  %v1301_v37 = vpack.c.bf16 %v187_v31, %v174_v29  ;;  %v303_v18 = vld [vmem:[%s2802_s1 + $0x918] sm:$0xff]  ;;  %v318_v24 = vld [vmem:[%s2802_s1 + $0x990] sm:$0xff]  ;;  %v304_v29 = vld [vmem:[%s2802_s1 + $0x920] sm:$0xff] }
  0x4b   :  { %1220 = vmatprep.subr.bf16.mxu0 %v1219_v38  ;;  %1284 = vmatprep.subr.bf16.mxu1 %v1283_v42  ;;  %v1239_v38 = vpack.c.bf16 %v212_v33, %v199_v32  ;;  %v1303_v42 = vpack.c.bf16 %v214_v35, %v201_v34  ;;  %v302_v28 = vld [vmem:[%s2802_s1 + $0x910] sm:$0xff]  ;;  %v315_v19 = vld [vmem:[%s2802_s1 + $0x978] sm:$0xff]  ;;  %v317_v31 = vld [vmem:[%s2802_s1 + $0x988] sm:$0xff] }
  0x4c   :  { %v329_v32 = vld [vmem:[%s2802_s1 + $0x9e8] sm:$0xff]  ;;  %v342_v33 = vld [vmem:[%s2802_s1 + $0xa50] sm:$0xff]  ;;  %v331_v34 = vld [vmem:[%s2802_s1 + $0x9f8] sm:$0xff] }
  0x4d   :  { %v344_v35 = vld [vmem:[%s2802_s1 + $0xa60] sm:$0xff] }
  0x4e   :  { %1222 = vmatpush1.bf16.msra.mxu0 %v1221_v49  ;;  %1286 = vmatpush1.bf16.msra.mxu1 %v1285_v50  ;;  %v1241_v49 = vpack.c.bf16 %v211_v40, %v198_v39  ;;  %v1305_v50 = vpack.c.bf16 %v213_v43, %v200_v41  ;;  %v328_v39 = vld [vmem:[%s2802_s1 + $0x9e0] sm:$0xff]  ;;  %v341_v40 = vld [vmem:[%s2802_s1 + $0xa48] sm:$0xff]  ;;  %v330_v41 = vld [vmem:[%s2802_s1 + $0x9f0] sm:$0xff] }
  0x4f   :  { %1224 = vmatprep.subr.bf16.mxu0 %v1223_v51  ;;  %1288 = vmatprep.subr.bf16.mxu1 %v1287_v55  ;;  %v1243_v51 = vpack.c.bf16 %v238_v45, %v225_v44  ;;  %v1307_v55 = vpack.c.bf16 %v240_v48, %v227_v47  ;;  %v343_v43 = vld [vmem:[%s2802_s1 + $0xa58] sm:$0xff]  ;;  %v368_v45 = vld [vmem:[%s2802_s1 + $0xb20] sm:$0xff]  ;;  %v357_v47 = vld [vmem:[%s2802_s1 + $0xac8] sm:$0xff] }
  0x50   :  { %v355_v44 = vld [vmem:[%s2802_s1 + $0xab8] sm:$0xff]  ;;  %v370_v48 = vld [vmem:[%s2802_s1 + $0xb30] sm:$0xff] }
  0x52   :  { %1226 = vmatpush1.bf16.msra.mxu0 %v1225_v62  ;;  %1290 = vmatpush1.bf16.msra.mxu1 %v1289_v63  ;;  %v1245_v62 = vpack.c.bf16 %v237_v53, %v224_v52  ;;  %v1309_v63 = vpack.c.bf16 %v239_v56, %v226_v54  ;;  %v354_v52 = vld [vmem:[%s2802_s1 + $0xab0] sm:$0xff]  ;;  %v367_v53 = vld [vmem:[%s2802_s1 + $0xb18] sm:$0xff]  ;;  %v356_v54 = vld [vmem:[%s2802_s1 + $0xac0] sm:$0xff] }
  0x53   :  { %1228 = vmatprep.subr.bf16.mxu0 %v1227_v0  ;;  %1292 = vmatprep.subr.bf16.mxu1 %v1291_v4  ;;  %v1247_v0 = vpack.c.bf16 %v264_v58, %v251_v57  ;;  %v1311_v4 = vpack.c.bf16 %v266_v61, %v253_v60  ;;  %v369_v56 = vld [vmem:[%s2802_s1 + $0xb28] sm:$0xff]  ;;  %v394_v58 = vld [vmem:[%s2802_s1 + $0xbf0] sm:$0xff]  ;;  %v383_v60 = vld [vmem:[%s2802_s1 + $0xb98] sm:$0xff] }
  0x54   :  { %v381_v57 = vld [vmem:[%s2802_s1 + $0xb88] sm:$0xff]  ;;  %v396_v61 = vld [vmem:[%s2802_s1 + $0xc00] sm:$0xff] }
  0x56   :  { %1230 = vmatpush1.bf16.msra.mxu0 %v1229_v10  ;;  %1294 = vmatpush1.bf16.msra.mxu1 %v1293_v11  ;;  %v1249_v10 = vpack.c.bf16 %v263_v2, %v250_v1  ;;  %v1313_v11 = vpack.c.bf16 %v265_v5, %v252_v3  ;;  %v380_v1 = vld [vmem:[%s2802_s1 + $0xb80] sm:$0xff]  ;;  %v393_v2 = vld [vmem:[%s2802_s1 + $0xbe8] sm:$0xff]  ;;  %v382_v3 = vld [vmem:[%s2802_s1 + $0xb90] sm:$0xff] }
  0x57   :  { %1232 = vmatprep.subr.bf16.mxu0 %v1231_v12  ;;  %1296 = vmatprep.subr.bf16.mxu1 %v1295_v16  ;;  %v1251_v12 = vpack.c.bf16 %v290_v7, %v277_v6  ;;  %v1315_v16 = vpack.c.bf16 %v292_v9, %v279_v8  ;;  %v395_v5 = vld [vmem:[%s2802_s1 + $0xbf8] sm:$0xff]  ;;  %v420_v7 = vld [vmem:[%s2802_s1 + $0xcc0] sm:$0xff]  ;;  %v409_v8 = vld [vmem:[%s2802_s1 + $0xc68] sm:$0xff] }
  0x58   :  { %v407_v6 = vld [vmem:[%s2802_s1 + $0xc58] sm:$0xff]  ;;  %v422_v9 = vld [vmem:[%s2802_s1 + $0xcd0] sm:$0xff] }
  0x5a   :  { %1234 = vmatpush1.bf16.msra.mxu0 %v1233_v25  ;;  %1298 = vmatpush1.bf16.msra.mxu1 %v1297_v26  ;;  %v1253_v25 = vpack.c.bf16 %v289_v14, %v276_v13  ;;  %v1317_v26 = vpack.c.bf16 %v291_v17, %v278_v15  ;;  %v406_v13 = vld [vmem:[%s2802_s1 + $0xc50] sm:$0xff]  ;;  %v419_v14 = vld [vmem:[%s2802_s1 + $0xcb8] sm:$0xff]  ;;  %v408_v15 = vld [vmem:[%s2802_s1 + $0xc60] sm:$0xff] }
  0x5b   :  { %1236 = vmatprep.subr.bf16.mxu0 %v1235_v27  ;;  %1300 = vmatprep.subr.bf16.mxu1 %v1299_v30  ;;  %v1255_v27 = vpack.c.bf16 %v316_v20, %v303_v18  ;;  %v1319_v30 = vpack.c.bf16 %v318_v24, %v305_v23  ;;  %v421_v17 = vld [vmem:[%s2802_s1 + $0xcc8] sm:$0xff]  ;;  %v34_v20 = vld [vmem:[%s2802_s1 + $0xb0] sm:$0xff]  ;;  %v23_v23 = vld [vmem:[%s2802_s1 + $0x58] sm:$0xff] }
  0x5c   :  { %v21_v18 = vld [vmem:[%s2802_s1 + $0x48] sm:$0xff]  ;;  %v36_v24 = vld [vmem:[%s2802_s1 + $0xc0] sm:$0xff] }
  0x5e   :  { %1238 = vmatpush1.bf16.msra.mxu0 %v1237_v36  ;;  %1302 = vmatpush1.bf16.msra.mxu1 %v1301_v37  ;;  %v1257_v36 = vpack.c.bf16 %v315_v19, %v302_v28  ;;  %v1321_v37 = vpack.c.bf16 %v317_v31, %v304_v29  ;;  %v20_v28 = vld [vmem:[%s2802_s1 + $0x40] sm:$0xff]  ;;  %v33_v19 = vld [vmem:[%s2802_s1 + $0xa8] sm:$0xff]  ;;  %v22_v29 = vld [vmem:[%s2802_s1 + $0x50] sm:$0xff] }
  0x5f   :  { %1240 = vmatprep.subr.bf16.mxu0 %v1239_v38  ;;  %1304 = vmatprep.subr.bf16.mxu1 %v1303_v42  ;;  %v1259_v38 = vpack.c.bf16 %v342_v33, %v329_v32  ;;  %v1323_v42 = vpack.c.bf16 %v344_v35, %v331_v34  ;;  %v35_v31 = vld [vmem:[%s2802_s1 + $0xb8] sm:$0xff]  ;;  %v60_v33 = vld [vmem:[%s2802_s1 + $0x180] sm:$0xff]  ;;  %v49_v34 = vld [vmem:[%s2802_s1 + $0x128] sm:$0xff] }
  0x60   :  { %v47_v32 = vld [vmem:[%s2802_s1 + $0x118] sm:$0xff]  ;;  %v62_v35 = vld [vmem:[%s2802_s1 + $0x190] sm:$0xff] }
  0x62   :  { %1242 = vmatpush1.bf16.msra.mxu0 %v1241_v49  ;;  %1306 = vmatpush1.bf16.msra.mxu1 %v1305_v50  ;;  %v1261_v49 = vpack.c.bf16 %v341_v40, %v328_v39  ;;  %v1325_v50 = vpack.c.bf16 %v343_v43, %v330_v41  ;;  %v46_v39 = vld [vmem:[%s2802_s1 + $0x110] sm:$0xff]  ;;  %v59_v40 = vld [vmem:[%s2802_s1 + $0x178] sm:$0xff]  ;;  %v48_v41 = vld [vmem:[%s2802_s1 + $0x120] sm:$0xff] }
  0x63   :  { %1244 = vmatprep.subr.bf16.mxu0 %v1243_v51  ;;  %1308 = vmatprep.subr.bf16.mxu1 %v1307_v55  ;;  %v1263_v51 = vpack.c.bf16 %v368_v45, %v355_v44  ;;  %v1327_v55 = vpack.c.bf16 %v370_v48, %v357_v47  ;;  %v61_v43 = vld [vmem:[%s2802_s1 + $0x188] sm:$0xff]  ;;  %v86_v45 = vld [vmem:[%s2802_s1 + $0x250] sm:$0xff]  ;;  %v75_v47 = vld [vmem:[%s2802_s1 + $0x1f8] sm:$0xff] }
  0x64   :  { %v73_v44 = vld [vmem:[%s2802_s1 + $0x1e8] sm:$0xff]  ;;  %v88_v48 = vld [vmem:[%s2802_s1 + $0x260] sm:$0xff] }
  0x66   :  { %1246 = vmatpush1.bf16.msra.mxu0 %v1245_v62  ;;  %1310 = vmatpush1.bf16.msra.mxu1 %v1309_v63  ;;  %v1265_v62 = vpack.c.bf16 %v367_v53, %v354_v52  ;;  %v1329_v63 = vpack.c.bf16 %v369_v56, %v356_v54  ;;  %v72_v52 = vld [vmem:[%s2802_s1 + $0x1e0] sm:$0xff]  ;;  %v85_v53 = vld [vmem:[%s2802_s1 + $0x248] sm:$0xff]  ;;  %v74_v54 = vld [vmem:[%s2802_s1 + $0x1f0] sm:$0xff] }
  0x67   :  { %1248 = vmatprep.subr.bf16.mxu0 %v1247_v0  ;;  %1312 = vmatprep.subr.bf16.mxu1 %v1311_v4  ;;  %v1267_v0 = vpack.c.bf16 %v394_v58, %v381_v57  ;;  %v1331_v4 = vpack.c.bf16 %v396_v61, %v383_v60  ;;  %v87_v56 = vld [vmem:[%s2802_s1 + $0x258] sm:$0xff]  ;;  %v112_v58 = vld [vmem:[%s2802_s1 + $0x320] sm:$0xff]  ;;  %v101_v60 = vld [vmem:[%s2802_s1 + $0x2c8] sm:$0xff] }
  0x68   :  { %v99_v57 = vld [vmem:[%s2802_s1 + $0x2b8] sm:$0xff]  ;;  %v114_v61 = vld [vmem:[%s2802_s1 + $0x330] sm:$0xff] }
  0x6a   :  { %1250 = vmatpush1.bf16.msra.mxu0 %v1249_v10  ;;  %1314 = vmatpush1.bf16.msra.mxu1 %v1313_v11  ;;  %v1269_v10 = vpack.c.bf16 %v393_v2, %v380_v1  ;;  %v1333_v11 = vpack.c.bf16 %v395_v5, %v382_v3  ;;  %v98_v1 = vld [vmem:[%s2802_s1 + $0x2b0] sm:$0xff]  ;;  %v111_v2 = vld [vmem:[%s2802_s1 + $0x318] sm:$0xff]  ;;  %v100_v3 = vld [vmem:[%s2802_s1 + $0x2c0] sm:$0xff] }
  0x6b   :  { %1252 = vmatprep.subr.bf16.mxu0 %v1251_v12  ;;  %1316 = vmatprep.subr.bf16.mxu1 %v1315_v16  ;;  %v1271_v12 = vpack.c.bf16 %v420_v7, %v407_v6  ;;  %v1335_v16 = vpack.c.bf16 %v422_v9, %v409_v8  ;;  %v113_v5 = vld [vmem:[%s2802_s1 + $0x328] sm:$0xff]  ;;  %v138_v7 = vld [vmem:[%s2802_s1 + $0x3f0] sm:$0xff]  ;;  %v127_v8 = vld [vmem:[%s2802_s1 + $0x398] sm:$0xff] }
  0x6c   :  { %v125_v6 = vld [vmem:[%s2802_s1 + $0x388] sm:$0xff]  ;;  %v140_v9 = vld [vmem:[%s2802_s1 + $0x400] sm:$0xff] }
  0x6e   :  { %1254 = vmatpush1.bf16.msra.mxu0 %v1253_v25  ;;  %1318 = vmatpush1.bf16.msra.mxu1 %v1317_v26  ;;  %v1273_v25 = vpack.c.bf16 %v419_v14, %v406_v13  ;;  %v1337_v26 = vpack.c.bf16 %v421_v17, %v408_v15  ;;  %v124_v13 = vld [vmem:[%s2802_s1 + $0x380] sm:$0xff]  ;;  %v137_v14 = vld [vmem:[%s2802_s1 + $0x3e8] sm:$0xff]  ;;  %v126_v15 = vld [vmem:[%s2802_s1 + $0x390] sm:$0xff] }
  0x6f   :  { %1256 = vmatprep.subr.bf16.mxu0 %v1255_v27  ;;  %1320 = vmatprep.subr.bf16.mxu1 %v1319_v30  ;;  %v1339_v27 = vpack.c.bf16 %v34_v20, %v21_v18  ;;  %v1403_v30 = vpack.c.bf16 %v36_v24, %v23_v23  ;;  %v139_v17 = vld [vmem:[%s2802_s1 + $0x3f8] sm:$0xff]  ;;  %v164_v20 = vld [vmem:[%s2802_s1 + $0x4c0] sm:$0xff]  ;;  %v153_v23 = vld [vmem:[%s2802_s1 + $0x468] sm:$0xff] }
  0x70   :  { %v151_v18 = vld [vmem:[%s2802_s1 + $0x458] sm:$0xff]  ;;  %v166_v24 = vld [vmem:[%s2802_s1 + $0x4d0] sm:$0xff] }
  0x72   :  { %1258 = vmatpush1.bf16.msra.mxu0 %v1257_v36  ;;  %1322 = vmatpush1.bf16.msra.mxu1 %v1321_v37  ;;  %v1341_v36 = vpack.c.bf16 %v33_v19, %v20_v28  ;;  %v1405_v37 = vpack.c.bf16 %v35_v31, %v22_v29  ;;  %v150_v28 = vld [vmem:[%s2802_s1 + $0x450] sm:$0xff]  ;;  %v163_v19 = vld [vmem:[%s2802_s1 + $0x4b8] sm:$0xff]  ;;  %v152_v29 = vld [vmem:[%s2802_s1 + $0x460] sm:$0xff] }
  0x73   :  { %1260 = vmatprep.subr.bf16.mxu0 %v1259_v38  ;;  %1324 = vmatprep.subr.bf16.mxu1 %v1323_v42  ;;  %v1343_v38 = vpack.c.bf16 %v60_v33, %v47_v32  ;;  %v1407_v42 = vpack.c.bf16 %v62_v35, %v49_v34  ;;  %v165_v31 = vld [vmem:[%s2802_s1 + $0x4c8] sm:$0xff]  ;;  %v190_v33 = vld [vmem:[%s2802_s1 + $0x590] sm:$0xff]  ;;  %v179_v34 = vld [vmem:[%s2802_s1 + $0x538] sm:$0xff] }
  0x74   :  { %v177_v32 = vld [vmem:[%s2802_s1 + $0x528] sm:$0xff]  ;;  %v192_v35 = vld [vmem:[%s2802_s1 + $0x5a0] sm:$0xff] }
  0x76   :  { %1262 = vmatpush1.bf16.msra.mxu0 %v1261_v49  ;;  %1326 = vmatpush1.bf16.msra.mxu1 %v1325_v50  ;;  %v1345_v49 = vpack.c.bf16 %v59_v40, %v46_v39  ;;  %v1409_v50 = vpack.c.bf16 %v61_v43, %v48_v41  ;;  %v176_v39 = vld [vmem:[%s2802_s1 + $0x520] sm:$0xff]  ;;  %v189_v40 = vld [vmem:[%s2802_s1 + $0x588] sm:$0xff]  ;;  %v178_v41 = vld [vmem:[%s2802_s1 + $0x530] sm:$0xff] }
  0x77   :  { %1264 = vmatprep.subr.bf16.mxu0 %v1263_v51  ;;  %1328 = vmatprep.subr.bf16.mxu1 %v1327_v55  ;;  %v1347_v51 = vpack.c.bf16 %v86_v45, %v73_v44  ;;  %v1411_v55 = vpack.c.bf16 %v88_v48, %v75_v47  ;;  %v191_v43 = vld [vmem:[%s2802_s1 + $0x598] sm:$0xff]  ;;  %v216_v45 = vld [vmem:[%s2802_s1 + $0x660] sm:$0xff]  ;;  %v205_v47 = vld [vmem:[%s2802_s1 + $0x608] sm:$0xff] }
  0x78   :  { %v203_v44 = vld [vmem:[%s2802_s1 + $0x5f8] sm:$0xff]  ;;  %v218_v48 = vld [vmem:[%s2802_s1 + $0x670] sm:$0xff] }
  0x7a   :  { %1266 = vmatpush1.bf16.msra.mxu0 %v1265_v62  ;;  %1330 = vmatpush1.bf16.msra.mxu1 %v1329_v63  ;;  %v1349_v62 = vpack.c.bf16 %v85_v53, %v72_v52  ;;  %v1413_v63 = vpack.c.bf16 %v87_v56, %v74_v54  ;;  %v202_v52 = vld [vmem:[%s2802_s1 + $0x5f0] sm:$0xff]  ;;  %v215_v53 = vld [vmem:[%s2802_s1 + $0x658] sm:$0xff]  ;;  %v204_v54 = vld [vmem:[%s2802_s1 + $0x600] sm:$0xff] }
  0x7b   :  { %1268 = vmatprep.subr.bf16.mxu0 %v1267_v0  ;;  %1332 = vmatprep.subr.bf16.mxu1 %v1331_v4  ;;  %v1351_v0 = vpack.c.bf16 %v112_v58, %v99_v57  ;;  %v1415_v4 = vpack.c.bf16 %v114_v61, %v101_v60  ;;  %v217_v56 = vld [vmem:[%s2802_s1 + $0x668] sm:$0xff]  ;;  %v242_v58 = vld [vmem:[%s2802_s1 + $0x730] sm:$0xff]  ;;  %v231_v60 = vld [vmem:[%s2802_s1 + $0x6d8] sm:$0xff] }
  0x7c   :  { %v229_v57 = vld [vmem:[%s2802_s1 + $0x6c8] sm:$0xff]  ;;  %v244_v61 = vld [vmem:[%s2802_s1 + $0x740] sm:$0xff] }
  0x7e   :  { %1270 = vmatpush1.bf16.msra.mxu0 %v1269_v10  ;;  %1334 = vmatpush1.bf16.msra.mxu1 %v1333_v11  ;;  %v1353_v10 = vpack.c.bf16 %v111_v2, %v98_v1  ;;  %v1417_v11 = vpack.c.bf16 %v113_v5, %v100_v3  ;;  %v228_v1 = vld [vmem:[%s2802_s1 + $0x6c0] sm:$0xff]  ;;  %v241_v2 = vld [vmem:[%s2802_s1 + $0x728] sm:$0xff]  ;;  %v230_v3 = vld [vmem:[%s2802_s1 + $0x6d0] sm:$0xff] }
  0x7f   :  { %1272 = vmatprep.subr.bf16.mxu0 %v1271_v12  ;;  %1336 = vmatprep.subr.bf16.mxu1 %v1335_v16  ;;  %v1355_v12 = vpack.c.bf16 %v138_v7, %v125_v6  ;;  %v1419_v16 = vpack.c.bf16 %v140_v9, %v127_v8  ;;  %v243_v5 = vld [vmem:[%s2802_s1 + $0x738] sm:$0xff]  ;;  %v268_v7 = vld [vmem:[%s2802_s1 + $0x800] sm:$0xff]  ;;  %v257_v8 = vld [vmem:[%s2802_s1 + $0x7a8] sm:$0xff] }
  0x80   :  { %v255_v6 = vld [vmem:[%s2802_s1 + $0x798] sm:$0xff]  ;;  %v270_v9 = vld [vmem:[%s2802_s1 + $0x810] sm:$0xff] }
  0x82   :  { %1274 = vmatpush1.bf16.msra.mxu0 %v1273_v25  ;;  %1338 = vmatpush1.bf16.msra.mxu1 %v1337_v26  ;;  %v1357_v25 = vpack.c.bf16 %v137_v14, %v124_v13  ;;  %v1421_v26 = vpack.c.bf16 %v139_v17, %v126_v15  ;;  %v254_v13 = vld [vmem:[%s2802_s1 + $0x790] sm:$0xff]  ;;  %v267_v14 = vld [vmem:[%s2802_s1 + $0x7f8] sm:$0xff]  ;;  %v256_v15 = vld [vmem:[%s2802_s1 + $0x7a0] sm:$0xff] }
  0x83   :  { %1340 = vmatprep.subr.bf16.mxu0 %v1339_v27  ;;  %1404 = vmatprep.subr.bf16.mxu1 %v1403_v30  ;;  %v1359_v27 = vpack.c.bf16 %v164_v20, %v151_v18  ;;  %v1423_v30 = vpack.c.bf16 %v166_v24, %v153_v23  ;;  %v269_v17 = vld [vmem:[%s2802_s1 + $0x808] sm:$0xff]  ;;  %v294_v20 = vld [vmem:[%s2802_s1 + $0x8d0] sm:$0xff]  ;;  %v283_v23 = vld [vmem:[%s2802_s1 + $0x878] sm:$0xff] }
  0x84   :  { %v281_v18 = vld [vmem:[%s2802_s1 + $0x868] sm:$0xff]  ;;  %v296_v24 = vld [vmem:[%s2802_s1 + $0x8e0] sm:$0xff] }
  0x85   :  { %646 = vmatmul.mubr.f32.vlgmr.msra.gmra.mrb[2].mxu0 %v1946_v21  ;;  %717 = vmatmul.mubr.f32.vlgmr.msra.gmra.mrb[2].mxu1 %v1946_v21 }
  0x86   :  { %1342 = vmatpush1.bf16.msra.mxu0 %v1341_v36  ;;  %1406 = vmatpush1.bf16.msra.mxu1 %v1405_v37  ;;  %v1361_v36 = vpack.c.bf16 %v163_v19, %v150_v28  ;;  %v1425_v37 = vpack.c.bf16 %v165_v31, %v152_v29  ;;  %v280_v28 = vld [vmem:[%s2802_s1 + $0x860] sm:$0xff]  ;;  %v293_v19 = vld [vmem:[%s2802_s1 + $0x8c8] sm:$0xff]  ;;  %v282_v29 = vld [vmem:[%s2802_s1 + $0x870] sm:$0xff] }
  0x87   :  { %1344 = vmatprep.subr.bf16.mxu0 %v1343_v38  ;;  %1408 = vmatprep.subr.bf16.mxu1 %v1407_v42  ;;  %v1363_v38 = vpack.c.bf16 %v190_v33, %v177_v32  ;;  %v1427_v42 = vpack.c.bf16 %v192_v35, %v179_v34  ;;  %v295_v31 = vld [vmem:[%s2802_s1 + $0x8d8] sm:$0xff]  ;;  %v320_v33 = vld [vmem:[%s2802_s1 + $0x9a0] sm:$0xff]  ;;  %v309_v34 = vld [vmem:[%s2802_s1 + $0x948] sm:$0xff] }
  0x88   :  { %787 = vmatprep.mubr.f32.mxu0 %v1826_v22  ;;  %858 = vmatprep.mubr.f32.mxu1 %v1826_v22  ;;  %v307_v32 = vld [vmem:[%s2802_s1 + $0x938] sm:$0xff]  ;;  %v322_v35 = vld [vmem:[%s2802_s1 + $0x9b0] sm:$0xff] }
  0x8a   :  { %1346 = vmatpush1.bf16.msra.mxu0 %v1345_v49  ;;  %1410 = vmatpush1.bf16.msra.mxu1 %v1409_v50  ;;  %v1365_v49 = vpack.c.bf16 %v189_v40, %v176_v39  ;;  %v1429_v50 = vpack.c.bf16 %v191_v43, %v178_v41  ;;  %v306_v39 = vld [vmem:[%s2802_s1 + $0x930] sm:$0xff]  ;;  %v319_v40 = vld [vmem:[%s2802_s1 + $0x998] sm:$0xff]  ;;  %v308_v41 = vld [vmem:[%s2802_s1 + $0x940] sm:$0xff] }
  0x8b   :  { %1348 = vmatprep.subr.bf16.mxu0 %v1347_v51  ;;  %1412 = vmatprep.subr.bf16.mxu1 %v1411_v55  ;;  %v1367_v51 = vpack.c.bf16 %v216_v45, %v203_v44  ;;  %v1431_v55 = vpack.c.bf16 %v218_v48, %v205_v47  ;;  %v321_v43 = vld [vmem:[%s2802_s1 + $0x9a8] sm:$0xff]  ;;  %v346_v45 = vld [vmem:[%s2802_s1 + $0xa70] sm:$0xff]  ;;  %v335_v47 = vld [vmem:[%s2802_s1 + $0xa18] sm:$0xff] }
  0x8c   :  { %v333_v44 = vld [vmem:[%s2802_s1 + $0xa08] sm:$0xff]  ;;  %v348_v48 = vld [vmem:[%s2802_s1 + $0xa80] sm:$0xff] }
  0x8e   :  { %1350 = vmatpush1.bf16.msra.mxu0 %v1349_v62  ;;  %1414 = vmatpush1.bf16.msra.mxu1 %v1413_v63  ;;  %v1369_v62 = vpack.c.bf16 %v215_v53, %v202_v52  ;;  %v1433_v63 = vpack.c.bf16 %v217_v56, %v204_v54  ;;  %v332_v52 = vld [vmem:[%s2802_s1 + $0xa00] sm:$0xff]  ;;  %v345_v53 = vld [vmem:[%s2802_s1 + $0xa68] sm:$0xff]  ;;  %v334_v54 = vld [vmem:[%s2802_s1 + $0xa10] sm:$0xff] }
  0x8f   :  { %1352 = vmatprep.subr.bf16.mxu0 %v1351_v0  ;;  %1416 = vmatprep.subr.bf16.mxu1 %v1415_v4  ;;  %v1371_v0 = vpack.c.bf16 %v242_v58, %v229_v57  ;;  %v1435_v4 = vpack.c.bf16 %v244_v61, %v231_v60  ;;  %v347_v56 = vld [vmem:[%s2802_s1 + $0xa78] sm:$0xff]  ;;  %v372_v58 = vld [vmem:[%s2802_s1 + $0xb40] sm:$0xff]  ;;  %v361_v60 = vld [vmem:[%s2802_s1 + $0xae8] sm:$0xff] }
  0x90   :  { %v359_v57 = vld [vmem:[%s2802_s1 + $0xad8] sm:$0xff]  ;;  %v374_v61 = vld [vmem:[%s2802_s1 + $0xb50] sm:$0xff] }
  0x92   :  { %1354 = vmatpush1.bf16.msra.mxu0 %v1353_v10  ;;  %1418 = vmatpush1.bf16.msra.mxu1 %v1417_v11  ;;  %v1373_v10 = vpack.c.bf16 %v241_v2, %v228_v1  ;;  %v1437_v11 = vpack.c.bf16 %v243_v5, %v230_v3  ;;  %v358_v1 = vld [vmem:[%s2802_s1 + $0xad0] sm:$0xff]  ;;  %v371_v2 = vld [vmem:[%s2802_s1 + $0xb38] sm:$0xff]  ;;  %v360_v3 = vld [vmem:[%s2802_s1 + $0xae0] sm:$0xff] }
  0x93   :  { %1356 = vmatprep.subr.bf16.mxu0 %v1355_v12  ;;  %1420 = vmatprep.subr.bf16.mxu1 %v1419_v16  ;;  %v1375_v12 = vpack.c.bf16 %v268_v7, %v255_v6  ;;  %v1439_v16 = vpack.c.bf16 %v270_v9, %v257_v8  ;;  %v373_v5 = vld [vmem:[%s2802_s1 + $0xb48] sm:$0xff]  ;;  %v398_v7 = vld [vmem:[%s2802_s1 + $0xc10] sm:$0xff]  ;;  %v387_v8 = vld [vmem:[%s2802_s1 + $0xbb8] sm:$0xff] }
  0x94   :  { %v385_v6 = vld [vmem:[%s2802_s1 + $0xba8] sm:$0xff]  ;;  %v400_v9 = vld [vmem:[%s2802_s1 + $0xc20] sm:$0xff] }
  0x96   :  { %1358 = vmatpush1.bf16.msra.mxu0 %v1357_v25  ;;  %1422 = vmatpush1.bf16.msra.mxu1 %v1421_v26  ;;  %v1377_v25 = vpack.c.bf16 %v267_v14, %v254_v13  ;;  %v1441_v26 = vpack.c.bf16 %v269_v17, %v256_v15  ;;  %v384_v13 = vld [vmem:[%s2802_s1 + $0xba0] sm:$0xff]  ;;  %v397_v14 = vld [vmem:[%s2802_s1 + $0xc08] sm:$0xff]  ;;  %v386_v15 = vld [vmem:[%s2802_s1 + $0xbb0] sm:$0xff] }
  0x97   :  { %1360 = vmatprep.subr.bf16.mxu0 %v1359_v27  ;;  %1424 = vmatprep.subr.bf16.mxu1 %v1423_v30  ;;  %v1379_v27 = vpack.c.bf16 %v294_v20, %v281_v18  ;;  %v1443_v30 = vpack.c.bf16 %v296_v24, %v283_v23  ;;  %v399_v17 = vld [vmem:[%s2802_s1 + $0xc18] sm:$0xff]  ;;  %v424_v20 = vld [vmem:[%s2802_s1 + $0xce0] sm:$0xff]  ;;  %v413_v23 = vld [vmem:[%s2802_s1 + $0xc88] sm:$0xff] }
  0x98   :  { %v411_v18 = vld [vmem:[%s2802_s1 + $0xc78] sm:$0xff]  ;;  %v426_v24 = vld [vmem:[%s2802_s1 + $0xcf0] sm:$0xff] }
  0x9a   :  { %1362 = vmatpush1.bf16.msra.mxu0 %v1361_v36  ;;  %1426 = vmatpush1.bf16.msra.mxu1 %v1425_v37  ;;  %v1381_v36 = vpack.c.bf16 %v293_v19, %v280_v28  ;;  %v1445_v37 = vpack.c.bf16 %v295_v31, %v282_v29  ;;  %v410_v28 = vld [vmem:[%s2802_s1 + $0xc70] sm:$0xff]  ;;  %v423_v19 = vld [vmem:[%s2802_s1 + $0xcd8] sm:$0xff]  ;;  %v412_v29 = vld [vmem:[%s2802_s1 + $0xc80] sm:$0xff] }
  0x9b   :  { %1364 = vmatprep.subr.bf16.mxu0 %v1363_v38  ;;  %1428 = vmatprep.subr.bf16.mxu1 %v1427_v42  ;;  %v1383_v38 = vpack.c.bf16 %v320_v33, %v307_v32  ;;  %v1447_v42 = vpack.c.bf16 %v322_v35, %v309_v34  ;;  %v425_v31 = vld [vmem:[%s2802_s1 + $0xce8] sm:$0xff]  ;;  %v232_v32 = vld [vmem:[%s2802_s1 + $0x6e0] sm:$0xff]  ;;  %v1401_v34 = vpack.c.bf16 %v423_v19, %v410_v28 }
  0x9c   :  { %v245_v33 = vld [vmem:[%s2802_s1 + $0x748] sm:$0xff]  ;;  %v1465_v35 = vpack.c.bf16 %v425_v31, %v412_v29 }
  0x9e   :  { %1366 = vmatpush1.bf16.msra.mxu0 %v1365_v49  ;;  %1430 = vmatpush1.bf16.msra.mxu1 %v1429_v50  ;;  %v1385_v49 = vpack.c.bf16 %v319_v40, %v306_v39  ;;  %v1449_v50 = vpack.c.bf16 %v321_v43, %v308_v41  ;;  %v258_v39 = vld [vmem:[%s2802_s1 + $0x7b0] sm:$0xff]  ;;  %v271_v40 = vld [vmem:[%s2802_s1 + $0x818] sm:$0xff] }
  0x9f   :  { %1368 = vmatprep.subr.bf16.mxu0 %v1367_v51  ;;  %1432 = vmatprep.subr.bf16.mxu1 %v1431_v55  ;;  %v1387_v51 = vpack.c.bf16 %v346_v45, %v333_v44  ;;  %v1451_v55 = vpack.c.bf16 %v348_v48, %v335_v47  ;;  %v50_v43 = vld [vmem:[%s2802_s1 + $0x130] sm:$0xff]  ;;  %v63_v44 = vld [vmem:[%s2802_s1 + $0x198] sm:$0xff]  ;;  %v284_v45 = vld [vmem:[%s2802_s1 + $0x880] sm:$0xff] }
  0xa0   :  { %v297_v47 = vld [vmem:[%s2802_s1 + $0x8e8] sm:$0xff]  ;;  %v1473_v48 = vpack.c.bf16 %v63_v44, %v50_v43 }
  0xa2   :  { %1370 = vmatpush1.bf16.msra.mxu0 %v1369_v62  ;;  %1434 = vmatpush1.bf16.msra.mxu1 %v1433_v63  ;;  %v1389_v62 = vpack.c.bf16 %v345_v53, %v332_v52  ;;  %v1453_v63 = vpack.c.bf16 %v347_v56, %v334_v54  ;;  %v310_v52 = vld [vmem:[%s2802_s1 + $0x950] sm:$0xff]  ;;  %v323_v53 = vld [vmem:[%s2802_s1 + $0x9b8] sm:$0xff] }
  0xa3   :  { %1372 = vmatprep.subr.bf16.mxu0 %v1371_v0  ;;  %1436 = vmatprep.subr.bf16.mxu1 %v1435_v4  ;;  %v1391_v0 = vpack.c.bf16 %v372_v58, %v359_v57  ;;  %v1455_v4 = vpack.c.bf16 %v374_v61, %v361_v60  ;;  %v102_v56 = vld [vmem:[%s2802_s1 + $0x2d0] sm:$0xff]  ;;  %v336_v57 = vld [vmem:[%s2802_s1 + $0xa20] sm:$0xff]  ;;  %v349_v58 = vld [vmem:[%s2802_s1 + $0xa88] sm:$0xff] }
  0xa4   :  { %v1483_v61 = vpack.c.bf16 %v349_v58, %v336_v57 }
  0xa6   :  { %1374 = vmatpush1.bf16.msra.mxu0 %v1373_v10  ;;  %1438 = vmatpush1.bf16.msra.mxu1 %v1437_v11  ;;  %v1393_v10 = vpack.c.bf16 %v371_v2, %v358_v1  ;;  %v1457_v11 = vpack.c.bf16 %v373_v5, %v360_v3  ;;  %v375_v1 = vld [vmem:[%s2802_s1 + $0xb58] sm:$0xff] }
  0xa7   :  { %1376 = vmatprep.subr.bf16.mxu0 %v1375_v12  ;;  %1440 = vmatprep.subr.bf16.mxu1 %v1439_v16  ;;  %v1395_v12 = vpack.c.bf16 %v398_v7, %v385_v6  ;;  %v1459_v16 = vpack.c.bf16 %v400_v9, %v387_v8  ;;  %v167_v5 = vld [vmem:[%s2802_s1 + $0x4d8] sm:$0xff]  ;;  %v388_v6 = vld [vmem:[%s2802_s1 + $0xbc0] sm:$0xff]  ;;  %v401_v7 = vld [vmem:[%s2802_s1 + $0xc28] sm:$0xff] }
  0xa8   :  { %v1491_v9 = vpack.c.bf16 %v401_v7, %v388_v6 }
  0xaa   :  { %1378 = vmatpush1.bf16.msra.mxu0 %v1377_v25  ;;  %1442 = vmatpush1.bf16.msra.mxu1 %v1441_v26  ;;  %v1397_v25 = vpack.c.bf16 %v397_v14, %v384_v13  ;;  %v1461_v26 = vpack.c.bf16 %v399_v17, %v386_v15  ;;  %v427_v13 = vld [vmem:[%s2802_s1 + $0xcf8] sm:$0xff] }
  0xab   :  { %1380 = vmatprep.subr.bf16.mxu0 %v1379_v27  ;;  %1444 = vmatprep.subr.bf16.mxu1 %v1443_v30  ;;  %v1399_v27 = vpack.c.bf16 %v424_v20, %v411_v18  ;;  %v1463_v30 = vpack.c.bf16 %v426_v24, %v413_v23  ;;  %v219_v17 = vld [vmem:[%s2802_s1 + $0x678] sm:$0xff]  ;;  %v1500_v20 = vmov 1966171168  }
  0xac   :  { %v953_v23 = vunpack.c.l.s4 %v1500_v20 }
  0xae   :  { %1382 = vmatpush1.bf16.msra.mxu0 %v1381_v36  ;;  %1446 = vmatpush1.bf16.msra.mxu1 %v1445_v37  ;;  %v1467_v36 = vpack.c.bf16 %v245_v33, %v232_v32  ;;  %v24_v37 = vld [vmem:[%s2802_s1 + $0x60] sm:$0xff]  ;;  %v954_v24 = vunpack.c.0.s8 %v953_v23 }
  0xaf   :  { %1384 = vmatprep.subr.bf16.mxu0 %v1383_v38  ;;  %1448 = vmatprep.subr.bf16.mxu1 %v1447_v42  ;;  %v37_v38 = vld [vmem:[%s2802_s1 + $0xc8] sm:$0xff]  ;;  %v1471_v42 = vpack.c.bf16 %v271_v40, %v258_v39 }
  0xb0   :  { %v1469_v41 = vpack.c.bf16 %v37_v38, %v24_v37 }
  0xb2   :  { %1386 = vmatpush1.bf16.msra.mxu0 %v1385_v49  ;;  %1450 = vmatpush1.bf16.msra.mxu1 %v1449_v50  ;;  %v1475_v49 = vpack.c.bf16 %v297_v47, %v284_v45  ;;  %v76_v50 = vld [vmem:[%s2802_s1 + $0x200] sm:$0xff] }
  0xb3   :  { %1388 = vmatprep.subr.bf16.mxu0 %v1387_v51  ;;  %1452 = vmatprep.subr.bf16.mxu1 %v1451_v55  ;;  %v89_v51 = vld [vmem:[%s2802_s1 + $0x268] sm:$0xff]  ;;  %v1479_v55 = vpack.c.bf16 %v323_v53, %v310_v52 }
  0xb4   :  { %v1477_v54 = vpack.c.bf16 %v89_v51, %v76_v50 }
  0xb6   :  { %1390 = vmatpush1.bf16.msra.mxu0 %v1389_v62  ;;  %1454 = vmatpush1.bf16.msra.mxu1 %v1453_v63  ;;  %v128_v62 = vld [vmem:[%s2802_s1 + $0x3a0] sm:$0xff]  ;;  %v141_v63 = vld [vmem:[%s2802_s1 + $0x408] sm:$0xff] }
  0xb7   :  { %1392 = vmatprep.subr.bf16.mxu0 %v1391_v0  ;;  %1456 = vmatprep.subr.bf16.mxu1 %v1455_v4  ;;  %v362_v0 = vld [vmem:[%s2802_s1 + $0xaf0] sm:$0xff]  ;;  %v1485_v2 = vpack.c.bf16 %v141_v63, %v128_v62 }
  0xb8   :  { %v1487_v3 = vpack.c.bf16 %v375_v1, %v362_v0  ;;  %v154_v4 = vld [vmem:[%s2802_s1 + $0x470] sm:$0xff] }
  0xb9   :  { %v1489_v8 = vpack.c.bf16 %v167_v5, %v154_v4 }
  0xba   :  { %1394 = vmatpush1.bf16.msra.mxu0 %v1393_v10  ;;  %1458 = vmatpush1.bf16.msra.mxu1 %v1457_v11  ;;  %v180_v10 = vld [vmem:[%s2802_s1 + $0x540] sm:$0xff]  ;;  %v193_v11 = vld [vmem:[%s2802_s1 + $0x5a8] sm:$0xff] }
  0xbb   :  { %1396 = vmatprep.subr.bf16.mxu0 %v1395_v12  ;;  %1460 = vmatprep.subr.bf16.mxu1 %v1459_v16  ;;  %v414_v12 = vld [vmem:[%s2802_s1 + $0xc90] sm:$0xff]  ;;  %v1493_v14 = vpack.c.bf16 %v193_v11, %v180_v10 }
  0xbc   :  { %v1495_v15 = vpack.c.bf16 %v427_v13, %v414_v12  ;;  %v206_v16 = vld [vmem:[%s2802_s1 + $0x610] sm:$0xff] }
  0xbd   :  { %v1497_v18 = vpack.c.bf16 %v219_v17, %v206_v16 }
  0xbe   :  { %1398 = vmatpush1.bf16.msra.mxu0 %v1397_v25  ;;  %1462 = vmatpush1.bf16.msra.mxu1 %v1461_v26  ;;  %v957_v25 = vsub.s32 %v954_v24, %v1769_v59 }
  0xbf   :  { %1400 = vmatprep.subr.bf16.mxu0 %v1399_v27  ;;  %1464 = vmatprep.subr.bf16.mxu1 %v1463_v30 }
  0xc2   :  { %1402 = vmatpush1.bf16.msra.mxu0 %v1401_v34  ;;  %1466 = vmatpush1.bf16.msra.mxu1 %v1465_v35 }
  0xc3   :  { %1468 = vmatprep.subr.bf16.mxu0 %v1467_v36 }
  0xc5   :  { %788 = vmatmul.mubr.f32.vlgmr.msra.gmra.mrb[4].mxu0 %v1946_v21  ;;  %859 = vmatmul.mubr.f32.vlgmr.msra.gmra.mrb[4].mxu1 %v1946_v21 }
  0xc6   :  { %1470 = vmatpush3.bf16.msra.mxu0 %v1469_v41  ;;  %929 = vmatprep.mubr.f32.mxu0 %v1826_v22  ;;  %v115_v22 = vld [vmem:[%s2802_s1 + $0x338] sm:$0xff] }
  0xc7   :  { %1472 = vmatprep.subr.bf16.mxu0 %v1471_v42  ;;  %v1481_v60 = vpack.c.bf16 %v115_v22, %v102_v56 }
  0xca   :  { %1474 = vmatpush3.bf16.msra.mxu0 %v1473_v48 }
  0xcb   :  { %1476 = vmatprep.subr.bf16.mxu0 %v1475_v49 }
  0xce   :  { %1478 = vmatpush3.bf16.msra.mxu0 %v1477_v54 }
  0xcf   :  { %1480 = vmatprep.subr.bf16.mxu0 %v1479_v55 }
  0xd2   :  { %1482 = vmatpush3.bf16.msra.mxu0 %v1481_v60 }
  0xd3   :  { %1484 = vmatprep.subr.bf16.mxu0 %v1483_v61 }
  0xd6   :  { %1486 = vmatpush3.bf16.msra.mxu0 %v1485_v2 }
  0xd7   :  { %1488 = vmatprep.subr.bf16.mxu0 %v1487_v3 }
  0xda   :  { %1490 = vmatpush3.bf16.msra.mxu0 %v1489_v8 }
  0xdb   :  { %1492 = vmatprep.subr.bf16.mxu0 %v1491_v9 }
  0xde   :  { %1494 = vmatpush3.bf16.msra.mxu0 %v1493_v14 }
  0xdf   :  { %1496 = vmatprep.subr.bf16.mxu0 %v1495_v15 }
  0xe2   :  { %1498 = vmatpush3.bf16.msra.mxu0 %v1497_v18 }
  0xe5   :  { %930 = vmatmul.mubr.f32.vlgmr.msra.gmra.mrb[6].mxu0 %v1946_v21 }
 0x118   :  { %v505_v26 = vpop.f32.mrb[0].mxu0  ;;  %v576_v27 = vpop.f32.mrb[0].mxu1 }
 0x119   :  { %v507_v28 = vpop.f32.mrb[1].mxu0  ;;  %v578_v29 = vpop.f32.mrb[1].mxu1 }
 0x11a   :  { %v948_v19 = vcombine.low %v505_v26, %v507_v28  ;;  %v949_v30 = vcombine.low %v576_v27, %v578_v29 }
 0x11c   :  { %v958_v31 = vrot.slane %v948_v19, %v957_v25  ;;  %v965_v32 = vrot.slane %v949_v30, %v957_v25 }
 0x11e   :  { %v980_v33 = vcombine.low %v958_v31, %v965_v32 }
 0x120   :  { %v988_v42 = vrot.slane %v980_v33, %v957_v25 }
 0x158   :  { %v647_v34 = vpop.f32.mrb[2].mxu0  ;;  %v718_v35 = vpop.f32.mrb[2].mxu1 }
 0x159   :  { %v649_v36 = vpop.f32.mrb[3].mxu0  ;;  %v720_v38 = vpop.f32.mrb[3].mxu1 }
 0x15a   :  { %v950_v37 = vcombine.low %v647_v34, %v649_v36  ;;  %v951_v21 = vcombine.low %v718_v35, %v720_v38 }
 0x15c   :  { %v972_v39 = vrot.slane %v950_v37, %v957_v25  ;;  %v979_v40 = vrot.slane %v951_v21, %v957_v25 }
 0x15e   :  { %v981_v41 = vcombine.low %v972_v39, %v979_v40 }
 0x160   :  { %v995_v59 = vrot.slane %v981_v41, %v957_v25 }
 0x162   :  { %v996_v43 = vcombine.low %v988_v42, %v995_v59 }
 0x164   :  { %1038 = vst [vmem:[%s2804_s2] sm:$0xff] %v996_v43 }
 0x198   :  { %v789_v44 = vpop.f32.mrb[4].mxu0  ;;  %v860_v45 = vpop.f32.mrb[4].mxu1 }
 0x199   :  { %v791_v47 = vpop.f32.mrb[5].mxu0  ;;  %v862_v49 = vpop.f32.mrb[5].mxu1 }
 0x19a   :  { %v997_v48 = vcombine.low %v789_v44, %v791_v47  ;;  %v998_v50 = vcombine.low %v860_v45, %v862_v49 }
 0x19c   :  { %v1005_v51 = vrot.slane %v997_v48, %v957_v25  ;;  %v1012_v52 = vrot.slane %v998_v50, %v957_v25 }
 0x19e   :  { %v1020_v53 = vcombine.low %v1005_v51, %v1012_v52 }
 0x1a0   :  { %v1027_v57 = vrot.slane %v1020_v53, %v957_v25 }
 0x1b8   :  { %v1080_v54 = vpop.f32.mrb[6].mxu0 }
 0x1b9   :  { %v1081_v55 = vpop.f32.mrb[7].mxu0 }
 0x1ba   :  { %v1082_v56 = vadd.f32 %v1081_v55, %v1080_v54 }
 0x1bc   :  { %v1019_v22 = vrot.slane %v1082_v56, %v957_v25 }
 0x1be   :  { %v1034_v58 = vrot.slane %v1019_v22, %v957_v25 }
 0x1c0   :  { %v1035_v60 = vcombine.low %v1027_v57, %v1034_v58 }
 0x1c2   :  { %1043 = vst.msk [vmem:[%s2804_s2 + $0x8] sm:$0x1f] %vm1041_vm0, %v1035_v60 }

</bundles_post_ra>
